<compile_context>
chip_gen: v7x
topology: tpu7x:2x2x1
jax: 0.10.0
libtpu: 0.0.40
codegen_flags: <defaults>
</compile_context>

<pallas_src>
import jax
import jax.numpy as jnp
import numpy as np
from jax import lax
from jax.experimental import pallas as pl
from jax.experimental.pallas import tpu as pltpu

# ---------------------------------------------------------------------------
# Small, module-consistent configuration
# ---------------------------------------------------------------------------
B = 2        # batch
C = 8        # num_channel (EEG channels)
NC = 4       # num_classes
T = 64       # signal_length
F1 = 4       # filters_n1
F2 = 2 * F1  # filters_n1 * 2
KS = 9       # kernel_window_ssvep
KW = 5       # kernel_window
D3 = 2       # conv_3_dilation
D4 = 2       # conv_4_dilation
EPS = 1e-5   # BatchNorm eps

T1 = T - KS + 1        # time length after conv_1 (valid conv)
P3 = (KW // 2) * D3    # conv_3 padding -> output length stays T1
P4 = (KW // 2) * D4    # conv_4 padding -> output length stays T1
L = T1 * B             # batched lane width (lane = t*B + b)
TPR = 8                # rows per conv_3 im2col tap block (F1 padded to a sublane multiple)


def _elu(v):
    # torch.nn.ELU(alpha=1.0). exp(v)-1 (not expm1) to guarantee Mosaic lowering;
    # the accuracy delta is ~1e-7 absolute, far below the test tolerance.
    return jnp.where(v > 0, v, jnp.exp(v) - 1.0)


# ---------------------------------------------------------------------------
# Pallas kernel: whole forward pass, one invocation, whole batch at once
# ---------------------------------------------------------------------------
def _ssvep_kernel(w1_ref, c1_ref,                   # SMEM: folded conv_1 taps (F1,KS), shift (F1,)
                  x_ref,                            # VMEM: (C, T*B) batch-interleaved lanes
                  w2_ref, c2_ref,                   # (F1, F1*C), (F1,1)
                  w3_ref, c3_ref,                   # (F2, KW*TPR), (F2,1)
                  w4_ref, c4_ref,                   # (F2, KW*F2), (F2,1)
                  wh_ref, bh_ref, seg_ref,          # (NC,F2,L), (NC,1), (L,B)
                  out_ref,                          # VMEM out: (NC, B)
                  h1_s, r3_s, r4_s):                # VMEM scratch
    # ---- conv_1 (valid conv over time) + BN + ELU ---------------------------
    # Each shifted slice is read ONCE per tap (k outer, f inner); BN scale folded
    # into w1, shift c1 added before ELU. Result rows: f*C + c.
    accs = [jnp.zeros((C, L), jnp.float32) for _ in range(F1)]
    for k in range(KS):
        xs = x_ref[:, k * B:k * B + L]              # (C, L) — hoisted slice
        for f in range(F1):
            accs[f] = accs[f] + xs * w1_ref[f, k]
    for f in range(F1):
        h1_s[f * C:(f + 1) * C, :] = _elu(accs[f] + c1_ref[f])

    # ---- conv_2 (collapse EEG-channel axis): one batched matmul -------------
    h2 = _elu(jnp.dot(w2_ref[...], h1_s[...],
                      preferred_element_type=jnp.float32) + c2_ref[...])      # (F1, L)

    # ---- conv_3 (dilated, "same") via im2col scratch + one matmul -----------
    # Batch-interleaved lanes make a time shift of `sh` a lane shift of sh*B that
    # never mixes samples. Unused pad rows/lanes of the scratch stay zero and the
    # matching weight columns are zero.
    r3_s[...] = jnp.zeros_like(r3_s)
    for k in range(KW):
        sh = k * D3 - P3                            # time shift of this tap
        lo, hi = max(0, -sh), min(T1, T1 - sh)      # valid output time range
        pieces = []
        if lo > 0:
            pieces.append(jnp.zeros((F1, lo * B), jnp.float32))
        pieces.append(h2[:, (lo + sh) * B:(hi + sh) * B])
        if hi < T1:
            pieces.append(jnp.zeros((F1, (T1 - hi) * B), jnp.float32))
        row = pieces[0] if len(pieces) == 1 else jnp.concatenate(pieces, axis=1)
        r3_s[k * TPR:k * TPR + F1, :] = row         # aligned row block, full lane range
    h3 = _elu(jnp.dot(w3_ref[...], r3_s[...],
                      preferred_element_type=jnp.float32) + c3_ref[...])      # (F2, L)

    # ---- conv_4 (dilated, "same") via im2col scratch + one matmul -----------
    for k in range(KW):
        sh = k * D4 - P4
        lo, hi = max(0, -sh), min(T1, T1 - sh)
        pieces = []
        if lo > 0:
            pieces.append(jnp.zeros((F2, lo * B), jnp.float32))
        pieces.append(h3[:, (lo + sh) * B:(hi + sh) * B])
        if hi < T1:
            pieces.append(jnp.zeros((F2, (T1 - hi) * B), jnp.float32))
        row = pieces[0] if len(pieces) == 1 else jnp.concatenate(pieces, axis=1)
        r4_s[k * F2:(k + 1) * F2, :] = row
    h4 = _elu(jnp.dot(w4_ref[...], r4_s[...],
                      preferred_element_type=jnp.float32) + c4_ref[...])      # (F2, L)

    # ---- head: conv_mtl + fc folded into one (NC, F2, T1) tensor ------------
    # psum[n, l] = sum_f w_head[n, f, t(l)] * h4[f, l]; then one matmul with the
    # per-sample selector sums over time within each batch segment.
    psum = jnp.sum(wh_ref[...] * h4[None, :, :], axis=1)                      # (NC, L)
    out_ref[...] = jnp.dot(psum, seg_ref[...],
                           preferred_element_type=jnp.float32) + bh_ref[...]  # (NC, B)


# ---------------------------------------------------------------------------
# Wrapper: parameter folding (pure wrapper-side algebra) + pallas_call
# ---------------------------------------------------------------------------
def forward_pallas(x, P):
    hp = lax.Precision.HIGHEST

    # Fold conv bias + eval-mode BatchNorm into per-channel scale/shift:
    #   y = a * conv_nobias(x) + c ;  a = gamma/sqrt(var+eps), c = (bias-mean)*a + beta
    def fold(bias, g, beta, mean, var):
        a = g / jnp.sqrt(var + EPS)
        return a, (bias - mean) * a + beta

    a1, c1 = fold(P['b1'], P['g1'], P['be1'], P['m1'], P['v1'])
    a2, c2 = fold(P['b2'], P['g2'], P['be2'], P['m2'], P['v2'])
    a3, c3 = fold(P['b3'], P['g3'], P['be3'], P['m3'], P['v3'])
    a4, c4 = fold(P['b4'], P['g4'], P['be4'], P['m4'], P['v4'])

    # BN scale folded directly into the conv weights.
    w1f = P['w1'][:, 0, 0, :] * a1[:, None]                                   # (F1, KS)
    w2f = P['w2'][:, :, :, 0].reshape(F1, F1 * C) * a2[:, None]               # (F1, F1*C)
    w3t = jnp.transpose(P['w3'][:, :, 0, :], (0, 2, 1))                       # (F2, KW, F1)
    w3f = (jnp.pad(w3t, ((0, 0), (0, 0), (0, TPR - F1)))
           .reshape(F2, KW * TPR) * a3[:, None])                              # (F2, KW*TPR)
    w4f = (jnp.transpose(P['w4'][:, :, 0, :], (0, 2, 1))
           .reshape(F2, KW * F2) * a4[:, None])                               # (F2, KW*F2)

    # conv_mtl + fc folded into a single (NC, F2, T1) head tensor + bias.
    wm2 = P['wm'][:, :, 0, :]                                                 # (2NC, F2, T1)
    w_head = jnp.einsum('nj,jft->nft', P['wfc'], wm2, precision=hp)           # (NC, F2, T1)
    b_head = jnp.dot(P['wfc'], P['bm'], precision=hp) + P['bfc']              # (NC,)
    wh_int = jnp.repeat(w_head, B, axis=2)                                    # (NC, F2, L)

    # Batch-interleaved input (lane = t*B + b) and per-sample segment-sum selector.
    x_int = jnp.transpose(x, (1, 2, 0)).reshape(C, T * B)                     # (C, T*B)
    seg = jnp.tile(jnp.eye(B, dtype=jnp.float32), (T1, 1))                    # (L, B)

    smem = pl.BlockSpec(memory_space=pltpu.MemorySpace.SMEM)
    vmem = pl.BlockSpec(memory_space=pltpu.MemorySpace.VMEM)

    out_t = pl.pallas_call(
        _ssvep_kernel,
        out_shape=jax.ShapeDtypeStruct((NC, B), jnp.float32),
        in_specs=[smem, smem] + [vmem] * 10,
        out_specs=vmem,
        scratch_shapes=[pltpu.VMEM((F1 * C, L), jnp.float32),    # h1
                        pltpu.VMEM((KW * TPR, L), jnp.float32),  # conv_3 im2col
                        pltpu.VMEM((KW * F2, L), jnp.float32)],  # conv_4 im2col
    )(
        w1f, c1,
        x_int,
        w2f, c2[:, None],
        w3f, c3[:, None],
        w4f, c4[:, None],
        wh_int, b_head[:, None], seg,
    )
    return out_t.T                                                            # (B, NC)


# ---------------------------------------------------------------------------
# Pure-JAX reference (independent check with lax.conv_general_dilated)
# ---------------------------------------------------------------------------
def forward_reference(x, P):
    hp = lax.Precision.HIGHEST
    dn = ('NCHW', 'OIHW', 'NCHW')

    def bn(h, g, beta, mean, var):
        inv = (g / jnp.sqrt(var + EPS))[None, :, None, None]
        return (h - mean[None, :, None, None]) * inv + beta[None, :, None, None]

    h = x[:, None, :, :]                                          # (B, 1, C, T)
    h = lax.conv_general_dilated(h, P['w1'], (1, 1), [(0, 0), (0, 0)],
                                 dimension_numbers=dn, precision=hp)
    h = _elu(bn(h + P['b1'][None, :, None, None], P['g1'], P['be1'], P['m1'], P['v1']))
    h = lax.conv_general_dilated(h, P['w2'], (1, 1), [(0, 0), (0, 0)],
                                 dimension_numbers=dn, precision=hp)
    h = _elu(bn(h + P['b2'][None, :, None, None], P['g2'], P['be2'], P['m2'], P['v2']))
    h = lax.conv_general_dilated(h, P['w3'], (1, 1), [(0, 0), (P3, P3)],
                                 rhs_dilation=(1, D3), dimension_numbers=dn, precision=hp)
    h = _elu(bn(h + P['b3'][None, :, None, None], P['g3'], P['be3'], P['m3'], P['v3']))
    h = lax.conv_general_dilated(h, P['w4'], (1, 1), [(0, 0), (P4, P4)],
                                 rhs_dilation=(1, D4), dimension_numbers=dn, precision=hp)
    h = _elu(bn(h + P['b4'][None, :, None, None], P['g4'], P['be4'], P['m4'], P['v4']))

    h4 = h[:, :, 0, :]                                            # (B, F2, T1)
    feat = jnp.einsum('bft,jft->bj', h4, P['wm'][:, :, 0, :], precision=hp) + P['bm'][None, :]
    # base(x) -> (B, NC, 2); torch.flatten(start_dim=1) keeps this channel order.
    return jnp.dot(feat, P['wfc'].T, precision=hp) + P['bfc'][None, :]


# ---------------------------------------------------------------------------
# Deterministic parameter init (shapes match the nn.Module's __init__)
# ---------------------------------------------------------------------------
def init_params(key):
    keys = iter(jax.random.split(key, 32))

    def nrm(shape, scale=0.1):
        return scale * jax.random.normal(next(keys), shape, jnp.float32)

    def bn_params(n):
        g = 1.0 + 0.1 * jax.random.normal(next(keys), (n,), jnp.float32)
        beta = 0.1 * jax.random.normal(next(keys), (n,), jnp.float32)
        mean = 0.1 * jax.random.normal(next(keys), (n,), jnp.float32)
        var = 0.5 + jax.random.uniform(next(keys), (n,), jnp.float32)
        return g, beta, mean, var

    P = {}
    P['w1'] = nrm((F1, 1, 1, KS)); P['b1'] = nrm((F1,), 0.05)
    P['g1'], P['be1'], P['m1'], P['v1'] = bn_params(F1)
    P['w2'] = nrm((F1, F1, C, 1)); P['b2'] = nrm((F1,), 0.05)
    P['g2'], P['be2'], P['m2'], P['v2'] = bn_params(F1)
    P['w3'] = nrm((F2, F1, 1, KW)); P['b3'] = nrm((F2,), 0.05)
    P['g3'], P['be3'], P['m3'], P['v3'] = bn_params(F2)
    P['w4'] = nrm((F2, F2, 1, KW)); P['b4'] = nrm((F2,), 0.05)
    P['g4'], P['be4'], P['m4'], P['v4'] = bn_params(F2)
    P['wm'] = nrm((2 * NC, F2, 1, T1)); P['bm'] = nrm((2 * NC,), 0.05)
    P['wfc'] = nrm((NC, 2 * NC)); P['bfc'] = nrm((NC,), 0.05)
    return P


if __name__ == "__main__":
    key = jax.random.PRNGKey(0)
    kx, kp = jax.random.split(key)
    x = jax.random.normal(kx, (B, C, T), jnp.float32)   # (batch, num_channel, signal_length)
    params = init_params(kp)

    out = jax.jit(forward_pallas)(x, params)
    out = jax.block_until_ready(out)
    assert out.shape == (B, NC), out.shape

    # TODO(synk): Dropout(p=0.5) is treated as identity (inference mode); training-mode
    # dropout / batch statistics are not modeled.
    ref = forward_reference(x, params)
    np.testing.assert_allclose(np.asarray(out), np.asarray(ref), rtol=3e-2, atol=3e-2)

    print("KERNEL_OK")
</pallas_src>

<mosaic_0001>
module attributes {stable_mosaic.version = 11 : i64} {
  func.func @_ssvep_kernel(%arg0: memref<4x9xf32, #tpu.memory_space<smem>>, %arg1: memref<4xf32, #tpu.memory_space<smem>>, %arg2: memref<8x128xf32, #tpu.memory_space<vmem>>, %arg3: memref<4x32xf32, #tpu.memory_space<vmem>>, %arg4: memref<4x1xf32, #tpu.memory_space<vmem>>, %arg5: memref<8x40xf32, #tpu.memory_space<vmem>>, %arg6: memref<8x1xf32, #tpu.memory_space<vmem>>, %arg7: memref<8x40xf32, #tpu.memory_space<vmem>>, %arg8: memref<8x1xf32, #tpu.memory_space<vmem>>, %arg9: memref<4x8x112xf32, #tpu.memory_space<vmem>>, %arg10: memref<4x1xf32, #tpu.memory_space<vmem>>, %arg11: memref<112x2xf32, #tpu.memory_space<vmem>>, %arg12: memref<4x2xf32, #tpu.memory_space<vmem>>, %arg13: memref<32x112xf32, #tpu.memory_space<vmem>>, %arg14: memref<40x112xf32, #tpu.memory_space<vmem>>, %arg15: memref<40x112xf32, #tpu.memory_space<vmem>>) attributes {dimension_semantics = [], scalar_prefetch = 0 : i64, scratch_operands = 3 : i64, tpu.core_type = #tpu.core_type<tc>} {
    %cst = arith.constant 0.000000e+00 : f32
    %0 = vector.broadcast %cst : f32 to vector<8x112xf32>
    %cst_0 = arith.constant 0.000000e+00 : f32
    %1 = vector.broadcast %cst_0 : f32 to vector<8x112xf32>
    %cst_1 = arith.constant 0.000000e+00 : f32
    %2 = vector.broadcast %cst_1 : f32 to vector<8x112xf32>
    %cst_2 = arith.constant 0.000000e+00 : f32
    %3 = vector.broadcast %cst_2 : f32 to vector<8x112xf32>
    %c0 = arith.constant 0 : index
    %c0_3 = arith.constant 0 : index
    %4 = vector.load %arg2[%c0, %c0_3] : memref<8x128xf32, #tpu.memory_space<vmem>>, vector<8x112xf32>
    %c0_4 = arith.constant 0 : index
    %c0_5 = arith.constant 0 : index
    %5 = memref.load %arg0[%c0_4, %c0_5] : memref<4x9xf32, #tpu.memory_space<smem>>
    %6 = vector.broadcast %5 : f32 to vector<8x112xf32>
    %7 = arith.mulf %4, %6 : vector<8x112xf32>
    %8 = arith.addf %0, %7 : vector<8x112xf32>
    %c1 = arith.constant 1 : index
    %c0_6 = arith.constant 0 : index
    %9 = memref.load %arg0[%c1, %c0_6] : memref<4x9xf32, #tpu.memory_space<smem>>
    %10 = vector.broadcast %9 : f32 to vector<8x112xf32>
    %11 = arith.mulf %4, %10 : vector<8x112xf32>
    %12 = arith.addf %1, %11 : vector<8x112xf32>
    %c2 = arith.constant 2 : index
    %c0_7 = arith.constant 0 : index
    %13 = memref.load %arg0[%c2, %c0_7] : memref<4x9xf32, #tpu.memory_space<smem>>
    %14 = vector.broadcast %13 : f32 to vector<8x112xf32>
    %15 = arith.mulf %4, %14 : vector<8x112xf32>
    %16 = arith.addf %2, %15 : vector<8x112xf32>
    %c3 = arith.constant 3 : index
    %c0_8 = arith.constant 0 : index
    %17 = memref.load %arg0[%c3, %c0_8] : memref<4x9xf32, #tpu.memory_space<smem>>
    %18 = vector.broadcast %17 : f32 to vector<8x112xf32>
    %19 = arith.mulf %4, %18 : vector<8x112xf32>
    %20 = arith.addf %3, %19 : vector<8x112xf32>
    %c0_9 = arith.constant 0 : index
    %c2_10 = arith.constant 2 : index
    %21 = vector.load %arg2[%c0_9, %c2_10] : memref<8x128xf32, #tpu.memory_space<vmem>>, vector<8x112xf32>
    %c0_11 = arith.constant 0 : index
    %c1_12 = arith.constant 1 : index
    %22 = memref.load %arg0[%c0_11, %c1_12] : memref<4x9xf32, #tpu.memory_space<smem>>
    %23 = vector.broadcast %22 : f32 to vector<8x112xf32>
    %24 = arith.mulf %21, %23 : vector<8x112xf32>
    %25 = arith.addf %8, %24 : vector<8x112xf32>
    %c1_13 = arith.constant 1 : index
    %c1_14 = arith.constant 1 : index
    %26 = memref.load %arg0[%c1_13, %c1_14] : memref<4x9xf32, #tpu.memory_space<smem>>
    %27 = vector.broadcast %26 : f32 to vector<8x112xf32>
    %28 = arith.mulf %21, %27 : vector<8x112xf32>
    %29 = arith.addf %12, %28 : vector<8x112xf32>
    %c2_15 = arith.constant 2 : index
    %c1_16 = arith.constant 1 : index
    %30 = memref.load %arg0[%c2_15, %c1_16] : memref<4x9xf32, #tpu.memory_space<smem>>
    %31 = vector.broadcast %30 : f32 to vector<8x112xf32>
    %32 = arith.mulf %21, %31 : vector<8x112xf32>
    %33 = arith.addf %16, %32 : vector<8x112xf32>
    %c3_17 = arith.constant 3 : index
    %c1_18 = arith.constant 1 : index
    %34 = memref.load %arg0[%c3_17, %c1_18] : memref<4x9xf32, #tpu.memory_space<smem>>
    %35 = vector.broadcast %34 : f32 to vector<8x112xf32>
    %36 = arith.mulf %21, %35 : vector<8x112xf32>
    %37 = arith.addf %20, %36 : vector<8x112xf32>
    %c0_19 = arith.constant 0 : index
    %c4 = arith.constant 4 : index
    %38 = vector.load %arg2[%c0_19, %c4] : memref<8x128xf32, #tpu.memory_space<vmem>>, vector<8x112xf32>
    %c0_20 = arith.constant 0 : index
    %c2_21 = arith.constant 2 : index
    %39 = memref.load %arg0[%c0_20, %c2_21] : memref<4x9xf32, #tpu.memory_space<smem>>
    %40 = vector.broadcast %39 : f32 to vector<8x112xf32>
    %41 = arith.mulf %38, %40 : vector<8x112xf32>
    %42 = arith.addf %25, %41 : vector<8x112xf32>
    %c1_22 = arith.constant 1 : index
    %c2_23 = arith.constant 2 : index
    %43 = memref.load %arg0[%c1_22, %c2_23] : memref<4x9xf32, #tpu.memory_space<smem>>
    %44 = vector.broadcast %43 : f32 to vector<8x112xf32>
    %45 = arith.mulf %38, %44 : vector<8x112xf32>
    %46 = arith.addf %29, %45 : vector<8x112xf32>
    %c2_24 = arith.constant 2 : index
    %c2_25 = arith.constant 2 : index
    %47 = memref.load %arg0[%c2_24, %c2_25] : memref<4x9xf32, #tpu.memory_space<smem>>
    %48 = vector.broadcast %47 : f32 to vector<8x112xf32>
    %49 = arith.mulf %38, %48 : vector<8x112xf32>
    %50 = arith.addf %33, %49 : vector<8x112xf32>
    %c3_26 = arith.constant 3 : index
    %c2_27 = arith.constant 2 : index
    %51 = memref.load %arg0[%c3_26, %c2_27] : memref<4x9xf32, #tpu.memory_space<smem>>
    %52 = vector.broadcast %51 : f32 to vector<8x112xf32>
    %53 = arith.mulf %38, %52 : vector<8x112xf32>
    %54 = arith.addf %37, %53 : vector<8x112xf32>
    %c0_28 = arith.constant 0 : index
    %c6 = arith.constant 6 : index
    %55 = vector.load %arg2[%c0_28, %c6] : memref<8x128xf32, #tpu.memory_space<vmem>>, vector<8x112xf32>
    %c0_29 = arith.constant 0 : index
    %c3_30 = arith.constant 3 : index
    %56 = memref.load %arg0[%c0_29, %c3_30] : memref<4x9xf32, #tpu.memory_space<smem>>
    %57 = vector.broadcast %56 : f32 to vector<8x112xf32>
    %58 = arith.mulf %55, %57 : vector<8x112xf32>
    %59 = arith.addf %42, %58 : vector<8x112xf32>
    %c1_31 = arith.constant 1 : index
    %c3_32 = arith.constant 3 : index
    %60 = memref.load %arg0[%c1_31, %c3_32] : memref<4x9xf32, #tpu.memory_space<smem>>
    %61 = vector.broadcast %60 : f32 to vector<8x112xf32>
    %62 = arith.mulf %55, %61 : vector<8x112xf32>
    %63 = arith.addf %46, %62 : vector<8x112xf32>
    %c2_33 = arith.constant 2 : index
    %c3_34 = arith.constant 3 : index
    %64 = memref.load %arg0[%c2_33, %c3_34] : memref<4x9xf32, #tpu.memory_space<smem>>
    %65 = vector.broadcast %64 : f32 to vector<8x112xf32>
    %66 = arith.mulf %55, %65 : vector<8x112xf32>
    %67 = arith.addf %50, %66 : vector<8x112xf32>
    %c3_35 = arith.constant 3 : index
    %c3_36 = arith.constant 3 : index
    %68 = memref.load %arg0[%c3_35, %c3_36] : memref<4x9xf32, #tpu.memory_space<smem>>
    %69 = vector.broadcast %68 : f32 to vector<8x112xf32>
    %70 = arith.mulf %55, %69 : vector<8x112xf32>
    %71 = arith.addf %54, %70 : vector<8x112xf32>
    %c0_37 = arith.constant 0 : index
    %c8 = arith.constant 8 : index
    %72 = vector.load %arg2[%c0_37, %c8] : memref<8x128xf32, #tpu.memory_space<vmem>>, vector<8x112xf32>
    %c0_38 = arith.constant 0 : index
    %c4_39 = arith.constant 4 : index
    %73 = memref.load %arg0[%c0_38, %c4_39] : memref<4x9xf32, #tpu.memory_space<smem>>
    %74 = vector.broadcast %73 : f32 to vector<8x112xf32>
    %75 = arith.mulf %72, %74 : vector<8x112xf32>
    %76 = arith.addf %59, %75 : vector<8x112xf32>
    %c1_40 = arith.constant 1 : index
    %c4_41 = arith.constant 4 : index
    %77 = memref.load %arg0[%c1_40, %c4_41] : memref<4x9xf32, #tpu.memory_space<smem>>
    %78 = vector.broadcast %77 : f32 to vector<8x112xf32>
    %79 = arith.mulf %72, %78 : vector<8x112xf32>
    %80 = arith.addf %63, %79 : vector<8x112xf32>
    %c2_42 = arith.constant 2 : index
    %c4_43 = arith.constant 4 : index
    %81 = memref.load %arg0[%c2_42, %c4_43] : memref<4x9xf32, #tpu.memory_space<smem>>
    %82 = vector.broadcast %81 : f32 to vector<8x112xf32>
    %83 = arith.mulf %72, %82 : vector<8x112xf32>
    %84 = arith.addf %67, %83 : vector<8x112xf32>
    %c3_44 = arith.constant 3 : index
    %c4_45 = arith.constant 4 : index
    %85 = memref.load %arg0[%c3_44, %c4_45] : memref<4x9xf32, #tpu.memory_space<smem>>
    %86 = vector.broadcast %85 : f32 to vector<8x112xf32>
    %87 = arith.mulf %72, %86 : vector<8x112xf32>
    %88 = arith.addf %71, %87 : vector<8x112xf32>
    %c0_46 = arith.constant 0 : index
    %c10 = arith.constant 10 : index
    %89 = vector.load %arg2[%c0_46, %c10] : memref<8x128xf32, #tpu.memory_space<vmem>>, vector<8x112xf32>
    %c0_47 = arith.constant 0 : index
    %c5 = arith.constant 5 : index
    %90 = memref.load %arg0[%c0_47, %c5] : memref<4x9xf32, #tpu.memory_space<smem>>
    %91 = vector.broadcast %90 : f32 to vector<8x112xf32>
    %92 = arith.mulf %89, %91 : vector<8x112xf32>
    %93 = arith.addf %76, %92 : vector<8x112xf32>
    %c1_48 = arith.constant 1 : index
    %c5_49 = arith.constant 5 : index
    %94 = memref.load %arg0[%c1_48, %c5_49] : memref<4x9xf32, #tpu.memory_space<smem>>
    %95 = vector.broadcast %94 : f32 to vector<8x112xf32>
    %96 = arith.mulf %89, %95 : vector<8x112xf32>
    %97 = arith.addf %80, %96 : vector<8x112xf32>
    %c2_50 = arith.constant 2 : index
    %c5_51 = arith.constant 5 : index
    %98 = memref.load %arg0[%c2_50, %c5_51] : memref<4x9xf32, #tpu.memory_space<smem>>
    %99 = vector.broadcast %98 : f32 to vector<8x112xf32>
    %100 = arith.mulf %89, %99 : vector<8x112xf32>
    %101 = arith.addf %84, %100 : vector<8x112xf32>
    %c3_52 = arith.constant 3 : index
    %c5_53 = arith.constant 5 : index
    %102 = memref.load %arg0[%c3_52, %c5_53] : memref<4x9xf32, #tpu.memory_space<smem>>
    %103 = vector.broadcast %102 : f32 to vector<8x112xf32>
    %104 = arith.mulf %89, %103 : vector<8x112xf32>
    %105 = arith.addf %88, %104 : vector<8x112xf32>
    %c0_54 = arith.constant 0 : index
    %c12 = arith.constant 12 : index
    %106 = vector.load %arg2[%c0_54, %c12] : memref<8x128xf32, #tpu.memory_space<vmem>>, vector<8x112xf32>
    %c0_55 = arith.constant 0 : index
    %c6_56 = arith.constant 6 : index
    %107 = memref.load %arg0[%c0_55, %c6_56] : memref<4x9xf32, #tpu.memory_space<smem>>
    %108 = vector.broadcast %107 : f32 to vector<8x112xf32>
    %109 = arith.mulf %106, %108 : vector<8x112xf32>
    %110 = arith.addf %93, %109 : vector<8x112xf32>
    %c1_57 = arith.constant 1 : index
    %c6_58 = arith.constant 6 : index
    %111 = memref.load %arg0[%c1_57, %c6_58] : memref<4x9xf32, #tpu.memory_space<smem>>
    %112 = vector.broadcast %111 : f32 to vector<8x112xf32>
    %113 = arith.mulf %106, %112 : vector<8x112xf32>
    %114 = arith.addf %97, %113 : vector<8x112xf32>
    %c2_59 = arith.constant 2 : index
    %c6_60 = arith.constant 6 : index
    %115 = memref.load %arg0[%c2_59, %c6_60] : memref<4x9xf32, #tpu.memory_space<smem>>
    %116 = vector.broadcast %115 : f32 to vector<8x112xf32>
    %117 = arith.mulf %106, %116 : vector<8x112xf32>
    %118 = arith.addf %101, %117 : vector<8x112xf32>
    %c3_61 = arith.constant 3 : index
    %c6_62 = arith.constant 6 : index
    %119 = memref.load %arg0[%c3_61, %c6_62] : memref<4x9xf32, #tpu.memory_space<smem>>
    %120 = vector.broadcast %119 : f32 to vector<8x112xf32>
    %121 = arith.mulf %106, %120 : vector<8x112xf32>
    %122 = arith.addf %105, %121 : vector<8x112xf32>
    %c0_63 = arith.constant 0 : index
    %c14 = arith.constant 14 : index
    %123 = vector.load %arg2[%c0_63, %c14] : memref<8x128xf32, #tpu.memory_space<vmem>>, vector<8x112xf32>
    %c0_64 = arith.constant 0 : index
    %c7 = arith.constant 7 : index
    %124 = memref.load %arg0[%c0_64, %c7] : memref<4x9xf32, #tpu.memory_space<smem>>
    %125 = vector.broadcast %124 : f32 to vector<8x112xf32>
    %126 = arith.mulf %123, %125 : vector<8x112xf32>
    %127 = arith.addf %110, %126 : vector<8x112xf32>
    %c1_65 = arith.constant 1 : index
    %c7_66 = arith.constant 7 : index
    %128 = memref.load %arg0[%c1_65, %c7_66] : memref<4x9xf32, #tpu.memory_space<smem>>
    %129 = vector.broadcast %128 : f32 to vector<8x112xf32>
    %130 = arith.mulf %123, %129 : vector<8x112xf32>
    %131 = arith.addf %114, %130 : vector<8x112xf32>
    %c2_67 = arith.constant 2 : index
    %c7_68 = arith.constant 7 : index
    %132 = memref.load %arg0[%c2_67, %c7_68] : memref<4x9xf32, #tpu.memory_space<smem>>
    %133 = vector.broadcast %132 : f32 to vector<8x112xf32>
    %134 = arith.mulf %123, %133 : vector<8x112xf32>
    %135 = arith.addf %118, %134 : vector<8x112xf32>
    %c3_69 = arith.constant 3 : index
    %c7_70 = arith.constant 7 : index
    %136 = memref.load %arg0[%c3_69, %c7_70] : memref<4x9xf32, #tpu.memory_space<smem>>
    %137 = vector.broadcast %136 : f32 to vector<8x112xf32>
    %138 = arith.mulf %123, %137 : vector<8x112xf32>
    %139 = arith.addf %122, %138 : vector<8x112xf32>
    %c0_71 = arith.constant 0 : index
    %c16 = arith.constant 16 : index
    %140 = vector.load %arg2[%c0_71, %c16] : memref<8x128xf32, #tpu.memory_space<vmem>>, vector<8x112xf32>
    %c0_72 = arith.constant 0 : index
    %c8_73 = arith.constant 8 : index
    %141 = memref.load %arg0[%c0_72, %c8_73] : memref<4x9xf32, #tpu.memory_space<smem>>
    %142 = vector.broadcast %141 : f32 to vector<8x112xf32>
    %143 = arith.mulf %140, %142 : vector<8x112xf32>
    %144 = arith.addf %127, %143 : vector<8x112xf32>
    %c1_74 = arith.constant 1 : index
    %c8_75 = arith.constant 8 : index
    %145 = memref.load %arg0[%c1_74, %c8_75] : memref<4x9xf32, #tpu.memory_space<smem>>
    %146 = vector.broadcast %145 : f32 to vector<8x112xf32>
    %147 = arith.mulf %140, %146 : vector<8x112xf32>
    %148 = arith.addf %131, %147 : vector<8x112xf32>
    %c2_76 = arith.constant 2 : index
    %c8_77 = arith.constant 8 : index
    %149 = memref.load %arg0[%c2_76, %c8_77] : memref<4x9xf32, #tpu.memory_space<smem>>
    %150 = vector.broadcast %149 : f32 to vector<8x112xf32>
    %151 = arith.mulf %140, %150 : vector<8x112xf32>
    %152 = arith.addf %135, %151 : vector<8x112xf32>
    %c3_78 = arith.constant 3 : index
    %c8_79 = arith.constant 8 : index
    %153 = memref.load %arg0[%c3_78, %c8_79] : memref<4x9xf32, #tpu.memory_space<smem>>
    %154 = vector.broadcast %153 : f32 to vector<8x112xf32>
    %155 = arith.mulf %140, %154 : vector<8x112xf32>
    %156 = arith.addf %139, %155 : vector<8x112xf32>
    %c0_80 = arith.constant 0 : index
    %157 = memref.load %arg1[%c0_80] : memref<4xf32, #tpu.memory_space<smem>>
    %158 = vector.broadcast %157 : f32 to vector<8x112xf32>
    %159 = arith.addf %144, %158 : vector<8x112xf32>
    %cst_81 = arith.constant 0.000000e+00 : f32
    %160 = vector.broadcast %cst_81 : f32 to vector<8x112xf32>
    %161 = arith.cmpf ogt, %159, %160 : vector<8x112xf32>
    %162 = math.exp %159 : vector<8x112xf32>
    %cst_82 = arith.constant 1.000000e+00 : f32
    %163 = vector.broadcast %cst_82 : f32 to vector<8x112xf32>
    %164 = arith.subf %162, %163 : vector<8x112xf32>
    %165 = arith.select %161, %159, %164 : vector<8x112xi1>, vector<8x112xf32>
    %c0_83 = arith.constant 0 : index
    %c0_84 = arith.constant 0 : index
    %166 = vector.load %arg13[%c0_83, %c0_84] : memref<32x112xf32, #tpu.memory_space<vmem>>, vector<8x112xf32>
    tpu.vector_store %arg13[%c0_83, %c0_84], %165 {strides = array<i32>} : memref<32x112xf32, #tpu.memory_space<vmem>>, vector<8x112xf32>,
    %c1_85 = arith.constant 1 : index
    %167 = memref.load %arg1[%c1_85] : memref<4xf32, #tpu.memory_space<smem>>
    %168 = vector.broadcast %167 : f32 to vector<8x112xf32>
    %169 = arith.addf %148, %168 : vector<8x112xf32>
    %cst_86 = arith.constant 0.000000e+00 : f32
    %170 = vector.broadcast %cst_86 : f32 to vector<8x112xf32>
    %171 = arith.cmpf ogt, %169, %170 : vector<8x112xf32>
    %172 = math.exp %169 : vector<8x112xf32>
    %cst_87 = arith.constant 1.000000e+00 : f32
    %173 = vector.broadcast %cst_87 : f32 to vector<8x112xf32>
    %174 = arith.subf %172, %173 : vector<8x112xf32>
    %175 = arith.select %171, %169, %174 : vector<8x112xi1>, vector<8x112xf32>
    %c8_88 = arith.constant 8 : index
    %c0_89 = arith.constant 0 : index
    %176 = vector.load %arg13[%c8_88, %c0_89] : memref<32x112xf32, #tpu.memory_space<vmem>>, vector<8x112xf32>
    tpu.vector_store %arg13[%c8_88, %c0_89], %175 {strides = array<i32>} : memref<32x112xf32, #tpu.memory_space<vmem>>, vector<8x112xf32>,
    %c2_90 = arith.constant 2 : index
    %177 = memref.load %arg1[%c2_90] : memref<4xf32, #tpu.memory_space<smem>>
    %178 = vector.broadcast %177 : f32 to vector<8x112xf32>
    %179 = arith.addf %152, %178 : vector<8x112xf32>
    %cst_91 = arith.constant 0.000000e+00 : f32
    %180 = vector.broadcast %cst_91 : f32 to vector<8x112xf32>
    %181 = arith.cmpf ogt, %179, %180 : vector<8x112xf32>
    %182 = math.exp %179 : vector<8x112xf32>
    %cst_92 = arith.constant 1.000000e+00 : f32
    %183 = vector.broadcast %cst_92 : f32 to vector<8x112xf32>
    %184 = arith.subf %182, %183 : vector<8x112xf32>
    %185 = arith.select %181, %179, %184 : vector<8x112xi1>, vector<8x112xf32>
    %c16_93 = arith.constant 16 : index
    %c0_94 = arith.constant 0 : index
    %186 = vector.load %arg13[%c16_93, %c0_94] : memref<32x112xf32, #tpu.memory_space<vmem>>, vector<8x112xf32>
    tpu.vector_store %arg13[%c16_93, %c0_94], %185 {strides = array<i32>} : memref<32x112xf32, #tpu.memory_space<vmem>>, vector<8x112xf32>,
    %c3_95 = arith.constant 3 : index
    %187 = memref.load %arg1[%c3_95] : memref<4xf32, #tpu.memory_space<smem>>
    %188 = vector.broadcast %187 : f32 to vector<8x112xf32>
    %189 = arith.addf %156, %188 : vector<8x112xf32>
    %cst_96 = arith.constant 0.000000e+00 : f32
    %190 = vector.broadcast %cst_96 : f32 to vector<8x112xf32>
    %191 = arith.cmpf ogt, %189, %190 : vector<8x112xf32>
    %192 = math.exp %189 : vector<8x112xf32>
    %cst_97 = arith.constant 1.000000e+00 : f32
    %193 = vector.broadcast %cst_97 : f32 to vector<8x112xf32>
    %194 = arith.subf %192, %193 : vector<8x112xf32>
    %195 = arith.select %191, %189, %194 : vector<8x112xi1>, vector<8x112xf32>
    %c24 = arith.constant 24 : index
    %c0_98 = arith.constant 0 : index
    %196 = vector.load %arg13[%c24, %c0_98] : memref<32x112xf32, #tpu.memory_space<vmem>>, vector<8x112xf32>
    tpu.vector_store %arg13[%c24, %c0_98], %195 {strides = array<i32>} : memref<32x112xf32, #tpu.memory_space<vmem>>, vector<8x112xf32>,
    %c0_99 = arith.constant 0 : index
    %c0_100 = arith.constant 0 : index
    %197 = vector.load %arg3[%c0_99, %c0_100] : memref<4x32xf32, #tpu.memory_space<vmem>>, vector<4x32xf32>
    %c0_101 = arith.constant 0 : index
    %c0_102 = arith.constant 0 : index
    %198 = vector.load %arg13[%c0_101, %c0_102] : memref<32x112xf32, #tpu.memory_space<vmem>>, vector<32x112xf32>
    %cst_103 = arith.constant dense<0.000000e+00> : vector<4x112xf32>
    %199 = tpu.matmul %197, %198, %cst_103 {dimension_numbers = #tpu.dot_dimension_numbers<[1], [0], [0], [1], [0, 0, 1, 1], [], []>} : vector<4x32xf32>, vector<32x112xf32>, vector<4x112xf32> -> vector<4x112xf32>
    %c0_104 = arith.constant 0 : index
    %c0_105 = arith.constant 0 : index
    %200 = vector.load %arg4[%c0_104, %c0_105] : memref<4x1xf32, #tpu.memory_space<vmem>>, vector<4x1xf32>
    %201 = vector.broadcast %200 : vector<4x1xf32> to vector<4x112xf32>
    %202 = arith.addf %199, %201 : vector<4x112xf32>
    %cst_106 = arith.constant 0.000000e+00 : f32
    %203 = vector.broadcast %cst_106 : f32 to vector<4x112xf32>
    %204 = arith.cmpf ogt, %202, %203 : vector<4x112xf32>
    %205 = math.exp %202 : vector<4x112xf32>
    %cst_107 = arith.constant 1.000000e+00 : f32
    %206 = vector.broadcast %cst_107 : f32 to vector<4x112xf32>
    %207 = arith.subf %205, %206 : vector<4x112xf32>
    %208 = arith.select %204, %202, %207 : vector<4x112xi1>, vector<4x112xf32>
    %cst_108 = arith.constant 0.000000e+00 : f32
    %209 = vector.broadcast %cst_108 : f32 to vector<40x112xf32>
    %c0_109 = arith.constant 0 : index
    %c0_110 = arith.constant 0 : index
    %210 = vector.load %arg14[%c0_109, %c0_110] : memref<40x112xf32, #tpu.memory_space<vmem>>, vector<40x112xf32>
    tpu.vector_store %arg14[%c0_109, %c0_110], %209 {strides = array<i32>} : memref<40x112xf32, #tpu.memory_space<vmem>>, vector<40x112xf32>,
    %cst_111 = arith.constant 0.000000e+00 : f32
    %211 = vector.broadcast %cst_111 : f32 to vector<4x8xf32>
    %212 = vector.extract_strided_slice %208 {offsets = [0, 0], sizes = [4, 104], strides = [1, 1]} : vector<4x112xf32> to vector<4x104xf32>
    %213 = tpu.concatenate %211, %212 in 1 : vector<4x8xf32>, vector<4x104xf32> -> vector<4x112xf32>
    %c0_112 = arith.constant 0 : index
    %c0_113 = arith.constant 0 : index
    %214 = vector.load %arg14[%c0_112, %c0_113] : memref<40x112xf32, #tpu.memory_space<vmem>>, vector<4x112xf32>
    tpu.vector_store %arg14[%c0_112, %c0_113], %213 {strides = array<i32>} : memref<40x112xf32, #tpu.memory_space<vmem>>, vector<4x112xf32>,
    %cst_114 = arith.constant 0.000000e+00 : f32
    %215 = vector.broadcast %cst_114 : f32 to vector<4x4xf32>
    %216 = vector.extract_strided_slice %208 {offsets = [0, 0], sizes = [4, 108], strides = [1, 1]} : vector<4x112xf32> to vector<4x108xf32>
    %217 = tpu.concatenate %215, %216 in 1 : vector<4x4xf32>, vector<4x108xf32> -> vector<4x112xf32>
    %c8_115 = arith.constant 8 : index
    %c0_116 = arith.constant 0 : index
    %218 = vector.load %arg14[%c8_115, %c0_116] : memref<40x112xf32, #tpu.memory_space<vmem>>, vector<4x112xf32>
    tpu.vector_store %arg14[%c8_115, %c0_116], %217 {strides = array<i32>} : memref<40x112xf32, #tpu.memory_space<vmem>>, vector<4x112xf32>,
    %c16_117 = arith.constant 16 : index
    %c0_118 = arith.constant 0 : index
    %219 = vector.load %arg14[%c16_117, %c0_118] : memref<40x112xf32, #tpu.memory_space<vmem>>, vector<4x112xf32>
    tpu.vector_store %arg14[%c16_117, %c0_118], %208 {strides = array<i32>} : memref<40x112xf32, #tpu.memory_space<vmem>>, vector<4x112xf32>,
    %220 = vector.extract_strided_slice %208 {offsets = [0, 4], sizes = [4, 108], strides = [1, 1]} : vector<4x112xf32> to vector<4x108xf32>
    %cst_119 = arith.constant 0.000000e+00 : f32
    %221 = vector.broadcast %cst_119 : f32 to vector<4x4xf32>
    %222 = tpu.concatenate %220, %221 in 1 : vector<4x108xf32>, vector<4x4xf32> -> vector<4x112xf32>
    %c24_120 = arith.constant 24 : index
    %c0_121 = arith.constant 0 : index
    %223 = vector.load %arg14[%c24_120, %c0_121] : memref<40x112xf32, #tpu.memory_space<vmem>>, vector<4x112xf32>
    tpu.vector_store %arg14[%c24_120, %c0_121], %222 {strides = array<i32>} : memref<40x112xf32, #tpu.memory_space<vmem>>, vector<4x112xf32>,
    %224 = vector.extract_strided_slice %208 {offsets = [0, 8], sizes = [4, 104], strides = [1, 1]} : vector<4x112xf32> to vector<4x104xf32>
    %cst_122 = arith.constant 0.000000e+00 : f32
    %225 = vector.broadcast %cst_122 : f32 to vector<4x8xf32>
    %226 = tpu.concatenate %224, %225 in 1 : vector<4x104xf32>, vector<4x8xf32> -> vector<4x112xf32>
    %c32 = arith.constant 32 : index
    %c0_123 = arith.constant 0 : index
    %227 = vector.load %arg14[%c32, %c0_123] : memref<40x112xf32, #tpu.memory_space<vmem>>, vector<4x112xf32>
    tpu.vector_store %arg14[%c32, %c0_123], %226 {strides = array<i32>} : memref<40x112xf32, #tpu.memory_space<vmem>>, vector<4x112xf32>,
    %c0_124 = arith.constant 0 : index
    %c0_125 = arith.constant 0 : index
    %228 = vector.load %arg5[%c0_124, %c0_125] : memref<8x40xf32, #tpu.memory_space<vmem>>, vector<8x40xf32>
    %c0_126 = arith.constant 0 : index
    %c0_127 = arith.constant 0 : index
    %229 = vector.load %arg14[%c0_126, %c0_127] : memref<40x112xf32, #tpu.memory_space<vmem>>, vector<40x112xf32>
    %cst_128 = arith.constant dense<0.000000e+00> : vector<8x112xf32>
    %230 = tpu.matmul %228, %229, %cst_128 {dimension_numbers = #tpu.dot_dimension_numbers<[1], [0], [0], [1], [0, 0, 1, 1], [], []>} : vector<8x40xf32>, vector<40x112xf32>, vector<8x112xf32> -> vector<8x112xf32>
    %c0_129 = arith.constant 0 : index
    %c0_130 = arith.constant 0 : index
    %231 = vector.load %arg6[%c0_129, %c0_130] : memref<8x1xf32, #tpu.memory_space<vmem>>, vector<8x1xf32>
    %232 = vector.broadcast %231 : vector<8x1xf32> to vector<8x112xf32>
    %233 = arith.addf %230, %232 : vector<8x112xf32>
    %cst_131 = arith.constant 0.000000e+00 : f32
    %234 = vector.broadcast %cst_131 : f32 to vector<8x112xf32>
    %235 = arith.cmpf ogt, %233, %234 : vector<8x112xf32>
    %236 = math.exp %233 : vector<8x112xf32>
    %cst_132 = arith.constant 1.000000e+00 : f32
    %237 = vector.broadcast %cst_132 : f32 to vector<8x112xf32>
    %238 = arith.subf %236, %237 : vector<8x112xf32>
    %239 = arith.select %235, %233, %238 : vector<8x112xi1>, vector<8x112xf32>
    %cst_133 = arith.constant 0.000000e+00 : f32
    %240 = vector.broadcast %cst_133 : f32 to vector<8x8xf32>
    %241 = vector.extract_strided_slice %239 {offsets = [0, 0], sizes = [8, 104], strides = [1, 1]} : vector<8x112xf32> to vector<8x104xf32>
    %242 = tpu.concatenate %240, %241 in 1 : vector<8x8xf32>, vector<8x104xf32> -> vector<8x112xf32>
    %c0_134 = arith.constant 0 : index
    %c0_135 = arith.constant 0 : index
    %243 = vector.load %arg15[%c0_134, %c0_135] : memref<40x112xf32, #tpu.memory_space<vmem>>, vector<8x112xf32>
    tpu.vector_store %arg15[%c0_134, %c0_135], %242 {strides = array<i32>} : memref<40x112xf32, #tpu.memory_space<vmem>>, vector<8x112xf32>,
    %cst_136 = arith.constant 0.000000e+00 : f32
    %244 = vector.broadcast %cst_136 : f32 to vector<8x4xf32>
    %245 = vector.extract_strided_slice %239 {offsets = [0, 0], sizes = [8, 108], strides = [1, 1]} : vector<8x112xf32> to vector<8x108xf32>
    %246 = tpu.concatenate %244, %245 in 1 : vector<8x4xf32>, vector<8x108xf32> -> vector<8x112xf32>
    %c8_137 = arith.constant 8 : index
    %c0_138 = arith.constant 0 : index
    %247 = vector.load %arg15[%c8_137, %c0_138] : memref<40x112xf32, #tpu.memory_space<vmem>>, vector<8x112xf32>
    tpu.vector_store %arg15[%c8_137, %c0_138], %246 {strides = array<i32>} : memref<40x112xf32, #tpu.memory_space<vmem>>, vector<8x112xf32>,
    %c16_139 = arith.constant 16 : index
    %c0_140 = arith.constant 0 : index
    %248 = vector.load %arg15[%c16_139, %c0_140] : memref<40x112xf32, #tpu.memory_space<vmem>>, vector<8x112xf32>
    tpu.vector_store %arg15[%c16_139, %c0_140], %239 {strides = array<i32>} : memref<40x112xf32, #tpu.memory_space<vmem>>, vector<8x112xf32>,
    %249 = vector.extract_strided_slice %239 {offsets = [0, 4], sizes = [8, 108], strides = [1, 1]} : vector<8x112xf32> to vector<8x108xf32>
    %cst_141 = arith.constant 0.000000e+00 : f32
    %250 = vector.broadcast %cst_141 : f32 to vector<8x4xf32>
    %251 = tpu.concatenate %249, %250 in 1 : vector<8x108xf32>, vector<8x4xf32> -> vector<8x112xf32>
    %c24_142 = arith.constant 24 : index
    %c0_143 = arith.constant 0 : index
    %252 = vector.load %arg15[%c24_142, %c0_143] : memref<40x112xf32, #tpu.memory_space<vmem>>, vector<8x112xf32>
    tpu.vector_store %arg15[%c24_142, %c0_143], %251 {strides = array<i32>} : memref<40x112xf32, #tpu.memory_space<vmem>>, vector<8x112xf32>,
    %253 = vector.extract_strided_slice %239 {offsets = [0, 8], sizes = [8, 104], strides = [1, 1]} : vector<8x112xf32> to vector<8x104xf32>
    %cst_144 = arith.constant 0.000000e+00 : f32
    %254 = vector.broadcast %cst_144 : f32 to vector<8x8xf32>
    %255 = tpu.concatenate %253, %254 in 1 : vector<8x104xf32>, vector<8x8xf32> -> vector<8x112xf32>
    %c32_145 = arith.constant 32 : index
    %c0_146 = arith.constant 0 : index
    %256 = vector.load %arg15[%c32_145, %c0_146] : memref<40x112xf32, #tpu.memory_space<vmem>>, vector<8x112xf32>
    tpu.vector_store %arg15[%c32_145, %c0_146], %255 {strides = array<i32>} : memref<40x112xf32, #tpu.memory_space<vmem>>, vector<8x112xf32>,
    %c0_147 = arith.constant 0 : index
    %c0_148 = arith.constant 0 : index
    %257 = vector.load %arg7[%c0_147, %c0_148] : memref<8x40xf32, #tpu.memory_space<vmem>>, vector<8x40xf32>
    %c0_149 = arith.constant 0 : index
    %c0_150 = arith.constant 0 : index
    %258 = vector.load %arg15[%c0_149, %c0_150] : memref<40x112xf32, #tpu.memory_space<vmem>>, vector<40x112xf32>
    %cst_151 = arith.constant dense<0.000000e+00> : vector<8x112xf32>
    %259 = tpu.matmul %257, %258, %cst_151 {dimension_numbers = #tpu.dot_dimension_numbers<[1], [0], [0], [1], [0, 0, 1, 1], [], []>} : vector<8x40xf32>, vector<40x112xf32>, vector<8x112xf32> -> vector<8x112xf32>
    %c0_152 = arith.constant 0 : index
    %c0_153 = arith.constant 0 : index
    %260 = vector.load %arg8[%c0_152, %c0_153] : memref<8x1xf32, #tpu.memory_space<vmem>>, vector<8x1xf32>
    %261 = vector.broadcast %260 : vector<8x1xf32> to vector<8x112xf32>
    %262 = arith.addf %259, %261 : vector<8x112xf32>
    %cst_154 = arith.constant 0.000000e+00 : f32
    %263 = vector.broadcast %cst_154 : f32 to vector<8x112xf32>
    %264 = arith.cmpf ogt, %262, %263 : vector<8x112xf32>
    %265 = math.exp %262 : vector<8x112xf32>
    %cst_155 = arith.constant 1.000000e+00 : f32
    %266 = vector.broadcast %cst_155 : f32 to vector<8x112xf32>
    %267 = arith.subf %265, %266 : vector<8x112xf32>
    %268 = arith.select %264, %262, %267 : vector<8x112xi1>, vector<8x112xf32>
    %c0_156 = arith.constant 0 : index
    %c0_157 = arith.constant 0 : index
    %c0_158 = arith.constant 0 : index
    %269 = vector.load %arg9[%c0_156, %c0_157, %c0_158] : memref<4x8x112xf32, #tpu.memory_space<vmem>>, vector<4x8x112xf32>
    %270 = vector.shape_cast %268 : vector<8x112xf32> to vector<1x8x112xf32>
    %271 = vector.broadcast %270 : vector<1x8x112xf32> to vector<4x8x112xf32>
    %272 = arith.mulf %269, %271 : vector<4x8x112xf32>
    %cst_159 = arith.constant dense<0.000000e+00> : vector<4x112xf32>
    %273 = vector.multi_reduction <add>, %272, %cst_159 [1] : vector<4x8x112xf32> to vector<4x112xf32>
    %c0_160 = arith.constant 0 : index
    %c0_161 = arith.constant 0 : index
    %274 = vector.load %arg11[%c0_160, %c0_161] : memref<112x2xf32, #tpu.memory_space<vmem>>, vector<112x2xf32>
    %cst_162 = arith.constant dense<0.000000e+00> : vector<4x2xf32>
    %275 = tpu.matmul %273, %274, %cst_162 {dimension_numbers = #tpu.dot_dimension_numbers<[1], [0], [0], [1], [0, 0, 1, 1], [], []>} : vector<4x112xf32>, vector<112x2xf32>, vector<4x2xf32> -> vector<4x2xf32>
    %c0_163 = arith.constant 0 : index
    %c0_164 = arith.constant 0 : index
    %276 = vector.load %arg10[%c0_163, %c0_164] : memref<4x1xf32, #tpu.memory_space<vmem>>, vector<4x1xf32>
    %277 = vector.broadcast %276 : vector<4x1xf32> to vector<4x2xf32>
    %278 = arith.addf %275, %277 : vector<4x2xf32>
    %c0_165 = arith.constant 0 : index
    %c0_166 = arith.constant 0 : index
    %279 = vector.load %arg12[%c0_165, %c0_166] : memref<4x2xf32, #tpu.memory_space<vmem>>, vector<4x2xf32>
    tpu.vector_store %arg12[%c0_165, %c0_166], %278 {strides = array<i32>} : memref<4x2xf32, #tpu.memory_space<vmem>>, vector<4x2xf32>,
    return
  }
}

</mosaic_0001>

<bundles_post_ra>
// kernel: squeeze.6
= control target key start
LH: loop header
LB: loop body
LE: loop exit
PB: predicated region body
PF: predicated region fallthrough
CT: control target
= control target key end

     0   :  { %vm21_vm0 = vcmask 64512   ;;  %s56_s14 = smov 8   ;;  %s57_s15 = smov 16   ;;  %vm27_vm1 = vcmask 261312   ;;  %vm33_vm2 = vcmask 195712   ;;  %vm39_vm3 = vcmask 130112   ;;  %s83_s0 = inlined_call_operand.vmem [shape: f32[4,4,8], index: 0, kind: input, shape index: {}]   ;;  %s84_s1 = inlined_call_operand.vmem [shape: f32[4,32], index: 1, kind: output, shape index: {}]  }
   0x1   :  { %v49_v0 = vld [vmem:[%s83_s0 + $0xc] sm:$0xf]  ;;  %v50_v1 = vld [vmem:[%s83_s0 + $0x8] sm:$0xf]  ;;  %v51_v2 = vld [vmem:[%s83_s0 + $0x4] sm:$0xf] }
   0x2   :  { %8 = vst [vmem:[#allocation1 + $0x18] sm:$0xf] %v49_v0  ;;  %13 = vst [vmem:[#allocation1 + $0x10] sm:$0xf] %v50_v1  ;;  %v18_v3 = vld [vmem:[%s83_s0] sm:$0xf] }
   0x3   :  { %17 = vst [vmem:[#allocation1 + $0x8] sm:$0xf] %v51_v2  ;;  %19 = vst [vmem:[#allocation1] sm:$0xf] %v18_v3  ;;  %s55_s0 = smov 24  }
   0xa   :  { %v24_v4 = vld [vmem:[#allocation1 + $0x3] ss:$8 sm:$0xf]   ;;  %v36_v5 = vld [vmem:[#allocation1 + $0x1] ss:$8 sm:$0xf]  }
   0xb   :  { %25 = vrot.lane.b32.xlu0 %v24_v4, %s55_s0  ;;  %v20_v6 = vld [vmem:[#allocation1] ss:$8 sm:$0xf]   ;;  %v30_v7 = vld [vmem:[#allocation1 + $0x2] ss:$8 sm:$0xf]   ;;  %37 = vrot.lane.b32.xlu1 %v36_v5, %s56_s14 }
   0xc   :  { %22 = vst.msk [vmem:[#allocation0] sm:$0xf] %vm21_vm0, %v20_v6  }
   0xf   :  { %31 = vrot.lane.b32.xlu0 %v30_v7, %s57_s15 }
  0x7d   :  { %v26_v8 = vpop.permute.xlu0 %25   ;;  %v38_v9 = vpop.permute.xlu1 %37  }
  0x7e   :  { %28 = vst.msk [vmem:[#allocation0] sm:$0xf] %vm27_vm1, %v26_v8  }
  0x81   :  { %v32_v10 = vpop.permute.xlu0 %31  }
  0x82   :  { %34 = vst.msk [vmem:[#allocation0] sm:$0xf] %vm33_vm2, %v32_v10  }
  0x83   :  { %40 = vst.msk [vmem:[#allocation0] sm:$0xf] %vm39_vm3, %v38_v9  }
  0x8a   :  { %v44_v11 = vld [vmem:[#allocation0] sm:$0xf] }
  0x8b   :  { %46 = vst [vmem:[%s84_s1] sm:$0xf] %v44_v11 }

// kernel: forward_pallas.1
= control target key start
LH: loop header
LB: loop body
LE: loop exit
PB: predicated region body
PF: predicated region fallthrough
CT: control target
= control target key end

     0   :  { %17 = vsyncpa [#allocation6], 0  ;;  %s1379_s0 = inlined_call_operand.vmem [shape: f32[4,9], index: 0, kind: input, shape index: {}]   ;;  %s1380_s1 = inlined_call_operand.vmem [shape: f32[4], index: 1, kind: input, shape index: {}]   ;;  %s1381_s2 = inlined_call_operand.vmem [shape: f32[8,128], index: 2, kind: input, shape index: {}]   ;;  %s1382_s3 = inlined_call_operand.vmem [shape: f32[4,32], index: 3, kind: input, shape index: {}]   ;;  %s1383_s4 = inlined_call_operand.vmem [shape: f32[4,1], index: 4, kind: input, shape index: {}]   ;;  %s1384_s5 = inlined_call_operand.vmem [shape: f32[8,40], index: 5, kind: input, shape index: {}]   ;;  %s1385_s6 = inlined_call_operand.vmem [shape: f32[8,1], index: 6, kind: input, shape index: {}]   ;;  %s1386_s7 = inlined_call_operand.vmem [shape: f32[8,40], index: 7, kind: input, shape index: {}]   ;;  %s1387_s8 = inlined_call_operand.vmem [shape: f32[8,1], index: 8, kind: input, shape index: {}]   ;;  %s1388_s9 = inlined_call_operand.vmem [shape: f32[4,8,112], index: 9, kind: input, shape index: {}]   ;;  %s1389_s10 = inlined_call_operand.vmem [shape: f32[4,1], index: 10, kind: input, shape index: {}]   ;;  %s1390_s11 = inlined_call_operand.vmem [shape: f32[112,2], index: 11, kind: input, shape index: {}]   ;;  %s1391_s12 = inlined_call_operand.vmem [shape: f32[4,2], index: 12, kind: output, shape index: {}]  }
   0x1   :  { %s25_s23 = sshll.u32 %s1379_s0, 4  ;;  %s26_s23 = int_to_ptr.vmem [resolvable:$true] %s25_s23 }
   0x2   :  { %18 = vsyncpa [#allocation8], 0  ;;  %s35_s26 = sshll.u32 %s1380_s1, 4  ;;  %s1067_s27 = scalar_lea.vmem %s26_s23, 64  ;;  %s36_s26 = int_to_ptr.vmem [resolvable:$true] %s35_s26 }
   0x3   :  { %p1068_p0 = scmp.ne.s32.totalorder %s26_s23, %s1067_s27  ;;  %p1072_p1 = scmp.lt.s32.totalorder %s26_s23, %s26_s23 }
   0x4   :  { %p1073_p2 = scmp.lt.s32.totalorder %s1067_s27, %s1067_s27 }
   0x6   :  { %p1074_p3 = por %p1073_p2, %p1072_p1 }
   0x8   :  { %p1075_p4 = pnand %p1074_p3, %p1068_p0 }
   0xa   :  { %1078 = shalt.err (!%p1075_p4)
}
   0xb   :  { %s1095_s28 = smov [#allocation5]   ;;  %s1079_s29 = scalar_lea.vmem %s36_s26, 16 }
   0xc   :  { %28 = dma.vmem_to_smem %s26_s23, 64, %s1095_s28, [#allocation6]  }
   0xd   :  { %p1080_p5 = scmp.ne.s32.totalorder %s36_s26, %s1079_s29  ;;  %p1084_p6 = scmp.lt.s32.totalorder %s36_s26, %s36_s26 }
   0xe   :  { %p1085_p7 = scmp.lt.s32.totalorder %s1079_s29, %s1079_s29 }
  0x10   :  { %p1086_p8 = por %p1085_p7, %p1084_p6 }
  0x12   :  { %p1087_p9 = pnand %p1086_p8, %p1080_p5 }
  0x14   :  { %1090 = shalt.err (!%p1087_p9)
}
  0x15   :  { %s1096_s0 = smov [#allocation7]  }
  0x16   :  { %38 = dma.vmem_to_smem %s36_s26, 16, %s1096_s0, [#allocation8]  }
  0x17   :  { %1091 = dma.done.wait [#allocation6], 64  }
  0x18   :  { %1092 = vsyncadd [#allocation6], 4294967232 }
  0x19   :  { %1093 = dma.done.wait [#allocation8], 16  }
  0x1a   :  { %1094 = vsyncadd [#allocation8], 4294967280 }
  0x1b   :  { %65 = sfence }
  0x1c   :  { %s854_s1 = sld [smem:[#allocation5 + $0x2]]  ;;  %s850_s30 = sld [smem:[#allocation5 + $0x1]]  ;;  %v1185_v0 = vld [vmem:[%s1381_s2] sm:$0xff]  ;;  %vm347_vm0 = vcmask 916480   ;;  %vm1106_vm1 = vmmov 0   ;;  %vm387_vm6 = vcmask 261120  }
  0x1d   :  { %s855_s13 = sld [smem:[#allocation5 + $0x82]]  ;;  %s851_s14 = sld [smem:[#allocation5 + $0x81]]  ;;  %vm477_vm7 = vcmask 912384   ;;  %vm489_vm9 = vcmask 883712   ;;  %vm475_vm10 = vcmask 64512   ;;  %vm482_vm11 = vcmask 31744  }
  0x1e   :  { %s853_s15 = sld [smem:[#allocation5 + $0x181]]  ;;  %s859_s19 = sld [smem:[#allocation5 + $0x83]]  ;;  %vm495_vm12 = vcmask 850944   ;;  %vm510_vm13 = vcmask 326656  }
  0x1f   :  { %s852_s16 = sld [smem:[#allocation5 + $0x101]]  ;;  %s858_s20 = sld [smem:[#allocation5 + $0x3]] }
  0x20   :  { %s1097_s21 = smov 124   ;;  %s1098_s22 = smov 126  }
  0x21   :  { %s857_s2 = sld [smem:[#allocation5 + $0x182]]  ;;  %s863_s24 = sld [smem:[#allocation5 + $0x84]] }
  0x22   :  { %v116_v1 = vstv %s854_s1  ;;  %v84_v3 = vstv %s850_s30  ;;  %s856_s23 = sld [smem:[#allocation5 + $0x102]]  ;;  %s862_s25 = sld [smem:[#allocation5 + $0x4]] }
  0x23   :  { %v117_v2 = vmul.f32 %v116_v1, %v1185_v0  ;;  %v85_v4 = vmul.f32 %v84_v3, %v1185_v0  ;;  %v124_v5 = vstv %s855_s13  ;;  %v92_v6 = vstv %s851_s14  ;;  %s861_s26 = sld [smem:[#allocation5 + $0x183]]  ;;  %s1099_s28 = smov 122  }
  0x24   :  { %v125_v7 = vmul.f32 %v124_v5, %v1185_v0  ;;  %v93_v8 = vmul.f32 %v92_v6, %v1185_v0  ;;  %v108_v9 = vstv %s853_s15  ;;  %v156_v13 = vstv %s859_s19  ;;  %s860_s27 = sld [smem:[#allocation5 + $0x103]]  ;;  %s867_s29 = sld [smem:[#allocation5 + $0x85]] }
  0x25   :  { %119 = vrot.lane.b32.xlu1 %v117_v2, %s1097_s21  ;;  %87 = vrot.lane.b32.xlu0 %v85_v4, %s1098_s22  ;;  %v100_v10 = vstv %s852_s16  ;;  %v109_v11 = vmul.f32 %v108_v9, %v1185_v0  ;;  %v148_v14 = vstv %s858_s20  ;;  %v157_v15 = vmul.f32 %v156_v13, %v1185_v0  ;;  %s866_s0 = sld [smem:[#allocation5 + $0x5]]  ;;  %s865_s1 = sld [smem:[#allocation5 + $0x184]] }
  0x26   :  { %v101_v12 = vmul.f32 %v100_v10, %v1185_v0  ;;  %v149_v16 = vmul.f32 %v148_v14, %v1185_v0  ;;  %s864_s30 = sld [smem:[#allocation5 + $0x104]]  ;;  %s1100_s13 = smov 120   ;;  %v1105_v2 = vmov 0.0|0.0   ;;  %v1107_v3 = vmov 0.0   ;;  %v381_v4 = vld [vmem:[%s1383_s4] sm:$0xf] }
  0x27   :  { %v140_v17 = vstv %s857_s2  ;;  %v188_v21 = vstv %s863_s24  ;;  %s871_s14 = sld [smem:[#allocation5 + $0x86]]  ;;  %s869_s16 = sld [smem:[#allocation5 + $0x185]]  ;;  %996 = vmatprep.subr.bf16.mxu0 %v1105_v2  ;;  %1014 = vmatprep.subr.bf16.mxu1 %v1105_v2  ;;  %466 = vst.msk [vmem:[#allocation3] sm:$0xff] %vm347_vm0, %v1107_v3  ;;  %467 = vst.msk [vmem:[#allocation3 + $0x8] sm:$0xff] %vm347_vm0, %v1107_v3  ;;  %v1108_v5 = vmov 0  }
  0x28   :  { %v132_v18 = vstv %s856_s23  ;;  %v141_v19 = vmul.f32 %v140_v17, %v1185_v0  ;;  %v180_v22 = vstv %s862_s25  ;;  %v189_v23 = vmul.f32 %v188_v21, %v1185_v0  ;;  %s870_s15 = sld [smem:[#allocation5 + $0x6]]  ;;  %s868_s17 = sld [smem:[#allocation5 + $0x105]]  ;;  %936 = vmatprep.mubr.msk.f32.mxu0 %vm1106_vm1, %v1107_v3  ;;  %468 = vst.msk [vmem:[#allocation3 + $0x10] sm:$0xff] %vm347_vm0, %v1107_v3  ;;  %469 = vst.msk [vmem:[#allocation3 + $0x18] sm:$0xff] %vm347_vm0, %v1107_v3 }
  0x29   :  { %127 = vrot.lane.b32.xlu1 %v125_v7, %s1097_s21  ;;  %95 = vrot.lane.b32.xlu0 %v93_v8, %s1098_s22  ;;  %v133_v20 = vmul.f32 %v132_v18, %v1185_v0  ;;  %v181_v24 = vmul.f32 %v180_v22, %v1185_v0  ;;  %v172_v25 = vstv %s861_s26  ;;  %s1101_s18 = smov 118   ;;  %s875_s19 = sld [smem:[#allocation5 + $0x87]]  ;;  %470 = vst.msk [vmem:[#allocation3 + $0x20] sm:$0xff] %vm347_vm0, %v1107_v3 }
  0x2a   :  { %v164_v26 = vstv %s860_s27  ;;  %v173_v27 = vmul.f32 %v172_v25, %v1185_v0  ;;  %v220_v29 = vstv %s867_s29  ;;  %s874_s20 = sld [smem:[#allocation5 + $0x7]]  ;;  %s872_s2 = sld [smem:[#allocation5 + $0x106]]  ;;  %993 = vmatprep.mubr.msk.f32.mxu1 %vm1106_vm1, %v1107_v3  ;;  %1051 = vset.pattern.permute.xlu0 %v1108_v5 }
  0x2b   :  { %v165_v28 = vmul.f32 %v164_v26, %v1185_v0  ;;  %v212_v30 = vstv %s866_s0  ;;  %v221_v31 = vmul.f32 %v220_v29, %v1185_v0  ;;  %v204_v33 = vstv %s865_s1  ;;  %s1102_s23 = smov 116   ;;  %s879_s24 = sld [smem:[#allocation5 + $0x88]]  ;;  %1052 = vset.pattern.permute.xlu1 %v1108_v5 }
  0x2c   :  { %v213_v32 = vmul.f32 %v212_v30, %v1185_v0  ;;  %v196_v34 = vstv %s864_s30  ;;  %v205_v35 = vmul.f32 %v204_v33, %v1185_v0  ;;  %s878_s25 = sld [smem:[#allocation5 + $0x8]]  ;;  %s877_s26 = sld [smem:[#allocation5 + $0x187]] }
  0x2d   :  { %111 = vrot.lane.b32.xlu1 %v109_v11, %s1098_s22  ;;  %103 = vrot.lane.b32.xlu0 %v101_v12, %s1098_s22  ;;  %v197_v36 = vmul.f32 %v196_v34, %v1185_v0  ;;  %v252_v37 = vstv %s871_s14  ;;  %v236_v41 = vstv %s869_s16  ;;  %s873_s22 = sld [smem:[#allocation5 + $0x186]]  ;;  %s876_s27 = sld [smem:[#allocation5 + $0x107]] }
  0x2e   :  { %v244_v38 = vstv %s870_s15  ;;  %v253_v39 = vmul.f32 %v252_v37, %v1185_v0  ;;  %v228_v42 = vstv %s868_s17  ;;  %v237_v43 = vmul.f32 %v236_v41, %v1185_v0  ;;  %s881_s29 = sld [smem:[#allocation5 + $0x188]]  ;;  %s1104_s1 = smov 112  }
  0x2f   :  { %v245_v40 = vmul.f32 %v244_v38, %v1185_v0  ;;  %v229_v44 = vmul.f32 %v228_v42, %v1185_v0  ;;  %v284_v45 = vstv %s875_s19  ;;  %s880_s0 = sld [smem:[#allocation5 + $0x108]] }
  0x30   :  { %v276_v46 = vstv %s874_s20  ;;  %v285_v47 = vmul.f32 %v284_v45, %v1185_v0  ;;  %v260_v50 = vstv %s872_s2  ;;  %s847_s15 = sld [smem:[#allocation5 + $0x80]]  ;;  %s887_s20 = sld [smem:[#allocation7 + $0x3]] }
  0x31   :  { %159 = vrot.lane.b32.xlu1 %v157_v15, %s1099_s28  ;;  %151 = vrot.lane.b32.xlu0 %v149_v16, %s1099_s28  ;;  %v277_v48 = vmul.f32 %v276_v46, %v1185_v0  ;;  %v261_v52 = vmul.f32 %v260_v50, %v1185_v0  ;;  %v316_v53 = vstv %s879_s24  ;;  %s67_s16 = sld [smem:[#allocation5]] }
  0x32   :  { %v308_v54 = vstv %s878_s25  ;;  %v317_v55 = vmul.f32 %v316_v53, %v1185_v0  ;;  %v300_v57 = vstv %s877_s26  ;;  %s849_s4 = sld [smem:[#allocation5 + $0x180]]  ;;  %s1110_s26 = smov 4  }
  0x33   :  { %v268_v49 = vstv %s873_s22  ;;  %v309_v56 = vmul.f32 %v308_v54, %v1185_v0  ;;  %v292_v58 = vstv %s876_s27  ;;  %v301_v59 = vmul.f32 %v300_v57, %v1185_v0  ;;  %s848_s17 = sld [smem:[#allocation5 + $0x100]]  ;;  %s885_s22 = sld [smem:[#allocation7 + $0x2]] }
  0x34   :  { %v269_v51 = vmul.f32 %v268_v49, %v1185_v0  ;;  %v293_v60 = vmul.f32 %v292_v58, %v1185_v0  ;;  %v332_v61 = vstv %s881_s29  ;;  %s339_s19 = sld [smem:[#allocation7]] }
  0x35   :  { %143 = vrot.lane.b32.xlu1 %v141_v19, %s1097_s21  ;;  %135 = vrot.lane.b32.xlu0 %v133_v20, %s1097_s21  ;;  %v324_v62 = vstv %s880_s0  ;;  %v333_v63 = vmul.f32 %v332_v61, %v1185_v0 }
  0x36   :  { %v325_v1 = vmul.f32 %v324_v62, %v1185_v0  ;;  %v72_v22 = vstv %s847_s15 }
  0x37   :  { %v73_v25 = vmul.f32 %v72_v22, %v1185_v0 }
  0x39   :  { %191 = vrot.lane.b32.xlu1 %v189_v23, %s1100_s13  ;;  %183 = vrot.lane.b32.xlu0 %v181_v24, %s1100_s13  ;;  %v68_v23 = vstv %s67_s16  ;;  %v76_v34 = vstv %s848_s17 }
  0x3d   :  { %175 = vrot.lane.b32.xlu1 %v173_v27, %s1099_s28  ;;  %167 = vrot.lane.b32.xlu0 %v165_v28, %s1099_s28  ;;  %s1103_s28 = smov 114   ;;  %v69_v27 = vmul.f32 %v68_v23, %v1185_v0 }
  0x41   :  { %223 = vrot.lane.b32.xlu1 %v221_v31, %s1101_s18  ;;  %215 = vrot.lane.b32.xlu0 %v213_v32, %s1101_s18  ;;  %v80_v32 = vstv %s849_s4 }
  0x42   :  { %v81_v38 = vmul.f32 %v80_v32, %v1185_v0 }
  0x45   :  { %207 = vrot.lane.b32.xlu1 %v205_v35, %s1100_s13  ;;  %199 = vrot.lane.b32.xlu0 %v197_v36, %s1100_s13 }
  0x49   :  { %255 = vrot.lane.b32.xlu1 %v253_v39, %s1102_s23  ;;  %247 = vrot.lane.b32.xlu0 %v245_v40, %s1102_s23  ;;  %v77_v40 = vmul.f32 %v76_v34, %v1185_v0 }
  0x4d   :  { %239 = vrot.lane.b32.xlu1 %v237_v43, %s1101_s18  ;;  %231 = vrot.lane.b32.xlu0 %v229_v44, %s1101_s18  ;;  %s883_s18 = sld [smem:[#allocation7 + $0x1]] }
  0x51   :  { %287 = vrot.lane.b32.xlu1 %v285_v47, %s1103_s28  ;;  %279 = vrot.lane.b32.xlu0 %v277_v48, %s1103_s28 }
  0x55   :  { %271 = vrot.lane.b32.xlu1 %v269_v51, %s1102_s23  ;;  %263 = vrot.lane.b32.xlu0 %v261_v52, %s1102_s23 }
  0x59   :  { %319 = vrot.lane.b32.xlu1 %v317_v55, %s1104_s1  ;;  %311 = vrot.lane.b32.xlu0 %v309_v56, %s1104_s1 }
  0x5d   :  { %303 = vrot.lane.b32.xlu1 %v301_v59, %s1103_s28  ;;  %295 = vrot.lane.b32.xlu0 %v293_v60, %s1103_s28  ;;  %v350_v59 = vstv %s883_s18 }
  0x61   :  { %335 = vrot.lane.b32.xlu1 %v333_v63, %s1104_s1  ;;  %327 = vrot.lane.b32.xlu0 %v325_v1, %s1104_s1  ;;  %v340_v63 = vstv %s339_s19 }
  0x65   :  { %384 = vperm.xlu0 %1051, %v381_v4  }
  0x97   :  { %v120_v6 = vpop.permute.xlu1 %119  ;;  %v88_v7 = vpop.permute.xlu0 %87 }
  0x98   :  { %v90_v31 = vadd.f32 %v88_v7, %v69_v27 }
  0x9a   :  { %v122_v37 = vadd.f32 %v120_v6, %v90_v31 }
  0x9b   :  { %v128_v8 = vpop.permute.xlu1 %127  ;;  %v96_v9 = vpop.permute.xlu0 %95 }
  0x9c   :  { %v98_v29 = vadd.f32 %v96_v9, %v73_v25 }
  0x9e   :  { %v130_v35 = vadd.f32 %v128_v8, %v98_v29 }
  0x9f   :  { %v112_v10 = vpop.permute.xlu1 %111  ;;  %v104_v11 = vpop.permute.xlu0 %103 }
  0xa0   :  { %v114_v46 = vadd.f32 %v112_v10, %v81_v38  ;;  %v106_v48 = vadd.f32 %v104_v11, %v77_v40 }
  0xa3   :  { %v160_v12 = vpop.permute.xlu1 %159  ;;  %v152_v13 = vpop.permute.xlu0 %151 }
  0xa4   :  { %v162_v39 = vadd.f32 %v160_v12, %v130_v35  ;;  %v154_v41 = vadd.f32 %v152_v13, %v122_v37 }
  0xa7   :  { %v144_v14 = vpop.permute.xlu1 %143  ;;  %v136_v15 = vpop.permute.xlu0 %135 }
  0xa8   :  { %v146_v51 = vadd.f32 %v144_v14, %v114_v46  ;;  %v138_v54 = vadd.f32 %v136_v15, %v106_v48  ;;  %v376_v46 = vld [vmem:[%s1382_s3] sm:$0xf]  ;;  %s1109_s3 = smov 8  }
  0xab   :  { %v192_v16 = vpop.permute.xlu1 %191  ;;  %v184_v17 = vpop.permute.xlu0 %183 }
  0xac   :  { %v194_v43 = vadd.f32 %v192_v16, %v162_v39  ;;  %v186_v45 = vadd.f32 %v184_v17, %v154_v41 }
  0xaf   :  { %v176_v18 = vpop.permute.xlu1 %175  ;;  %v168_v19 = vpop.permute.xlu0 %167 }
  0xb0   :  { %v178_v56 = vadd.f32 %v176_v18, %v146_v51  ;;  %v170_v0 = vadd.f32 %v168_v19, %v138_v54  ;;  %v368_v18 = vstv %s887_s20 }
  0xb3   :  { %v224_v20 = vpop.permute.xlu1 %223  ;;  %v216_v21 = vpop.permute.xlu0 %215 }
  0xb4   :  { %v226_v47 = vadd.f32 %v224_v20, %v194_v43  ;;  %v218_v49 = vadd.f32 %v216_v21, %v186_v45  ;;  %v359_v21 = vstv %s885_s22 }
  0xb7   :  { %v208_v24 = vpop.permute.xlu1 %207  ;;  %v200_v26 = vpop.permute.xlu0 %199 }
  0xb8   :  { %v210_v61 = vadd.f32 %v208_v24, %v178_v56  ;;  %v202_v4 = vadd.f32 %v200_v26, %v170_v0 }
  0xbb   :  { %v256_v28 = vpop.permute.xlu1 %255  ;;  %v248_v30 = vpop.permute.xlu0 %247 }
  0xbc   :  { %v258_v52 = vadd.f32 %v256_v28, %v226_v47  ;;  %v250_v55 = vadd.f32 %v248_v30, %v218_v49 }
  0xbf   :  { %v240_v33 = vpop.permute.xlu1 %239  ;;  %v232_v36 = vpop.permute.xlu0 %231 }
  0xc0   :  { %v242_v6 = vadd.f32 %v240_v33, %v210_v61  ;;  %v234_v8 = vadd.f32 %v232_v36, %v202_v4 }
  0xc3   :  { %v288_v42 = vpop.permute.xlu1 %287  ;;  %v280_v44 = vpop.permute.xlu0 %279 }
  0xc4   :  { %v290_v57 = vadd.f32 %v288_v42, %v258_v52  ;;  %v282_v58 = vadd.f32 %v280_v44, %v250_v55  ;;  %v504_v55 = vld [vmem:[%s1385_s6] sm:$0xff] }
  0xc7   :  { %v272_v50 = vpop.permute.xlu1 %271  ;;  %v264_v53 = vpop.permute.xlu0 %263 }
  0xc8   :  { %v274_v11 = vadd.f32 %v272_v50, %v242_v6  ;;  %v266_v14 = vadd.f32 %v264_v53, %v234_v8  ;;  %v498_v8 = vld [vmem:[%s1384_s5] sm:$0xff] }
  0xcb   :  { %v320_v60 = vpop.permute.xlu1 %319  ;;  %v312_v1 = vpop.permute.xlu0 %311 }
  0xcc   :  { %v322_v62 = vadd.f32 %v320_v60, %v290_v57  ;;  %v314_v5 = vadd.f32 %v312_v1, %v282_v58 }
  0xce   :  { %v351_v7 = vadd.f32 %v350_v59, %v322_v62  ;;  %v341_v9 = vadd.f32 %v340_v63, %v314_v5 }
  0xcf   :  { %v304_v10 = vpop.permute.xlu1 %303  ;;  %v296_v13 = vpop.permute.xlu0 %295 }
  0xd0   :  { %v353_v12 = vmul.f32 1.442695, %v351_v7  ;;  %v343_v15 = vmul.f32 1.442695, %v341_v9  ;;  %v306_v16 = vadd.f32 %v304_v10, %v274_v11  ;;  %v298_v17 = vadd.f32 %v296_v13, %v266_v14 }
  0xd1   :  { %vm352_vm2 = vcmp.gt.f32.partialorder %v351_v7, 0.0  ;;  %vm342_vm3 = vcmp.gt.f32.partialorder %v341_v9, 0.0 }
  0xd2   :  { %1053 = vpow2.f32 %v353_v12 }
  0xd3   :  { %1055 = vpow2.f32 %v343_v15  ;;  %v336_v19 = vpop.permute.xlu1 %335  ;;  %v328_v22 = vpop.permute.xlu0 %327 }
  0xd4   :  { %v338_v20 = vadd.f32 %v336_v19, %v306_v16  ;;  %v330_v23 = vadd.f32 %v328_v22, %v298_v17  ;;  %v617_v19 = vld [vmem:[%s1387_s8] sm:$0xff] }
  0xd6   :  { %v369_v24 = vadd.f32 %v368_v18, %v338_v20  ;;  %v360_v25 = vadd.f32 %v359_v21, %v330_v23  ;;  %v751_v18 = vld [vmem:[%s1389_s10] sm:$0xf] }
  0xd8   :  { %v371_v26 = vmul.f32 1.442695, %v369_v24  ;;  %v362_v27 = vmul.f32 1.442695, %v360_v25  ;;  %vm370_vm4 = vcmp.gt.f32.partialorder %v369_v24, 0.0  ;;  %vm361_vm5 = vcmp.gt.f32.partialorder %v360_v25, 0.0 }
  0xda   :  { %1057 = vpow2.f32 %v371_v26 }
  0xdb   :  { %1059 = vpow2.f32 %v362_v27 }
  0xdc   :  { %v1054_v28 = vpop.eup %1053 }
  0xdd   :  { %v1056_v29 = vpop.eup %1055  ;;  %v884_v30 = vadd.f32 -1.0, %v1054_v28 }
  0xde   :  { %v882_v31 = vadd.f32 -1.0, %v1056_v29 }
  0xdf   :  { %v356_v32 = vsel %vm352_vm2, %v351_v7, %v884_v30  ;;  %vm763_vm2 = vcmask 1042434  }
  0xe0   :  { %357 = vst.msk [vmem:[#allocation2 + $0x8] sm:$0xff] %vm347_vm0, %v356_v32  ;;  %v346_v33 = vsel %vm342_vm3, %v341_v9, %v882_v31  ;;  %vm765_vm3 = vcmask 1043459  }
  0xe1   :  { %348 = vst.msk [vmem:[#allocation2] sm:$0xff] %vm347_vm0, %v346_v33 }
  0xe4   :  { %v1058_v34 = vpop.eup %1057  ;;  %v385_v47 = vpop.permute.xlu0 %384 }
  0xe5   :  { %v1060_v35 = vpop.eup %1059  ;;  %v888_v36 = vadd.f32 -1.0, %v1058_v34  ;;  %v611_v34 = vld [vmem:[%s1386_s7] sm:$0xff] }
  0xe6   :  { %v886_v37 = vadd.f32 -1.0, %v1060_v35 }
  0xe7   :  { %v374_v38 = vsel %vm370_vm4, %v369_v24, %v888_v36  ;;  %v378_v39 = vld [vmem:[#allocation2 + $0x8] sm:$0xff]  ;;  %v737_v36 = vld [vmem:[%s1390_s11] sm:$0xff]  ;;  %vm839_vm4 = vcmask 11264  }
  0xe8   :  { %375 = vst.msk [vmem:[#allocation2 + $0x18] sm:$0xff] %vm347_vm0, %v374_v38  ;;  %v365_v40 = vsel %vm361_vm5, %v360_v25, %v886_v37  ;;  %v377_v41 = vld [vmem:[#allocation2] sm:$0xff]  ;;  %v738_v37 = vld [vmem:[%s1390_s11 + $0x8] sm:$0xff] }
  0xe9   :  { %366 = vst.msk [vmem:[#allocation2 + $0x10] sm:$0xff] %vm347_vm0, %v365_v40  ;;  %v997_v42 = vpack.c.bf16 %v378_v39, %v377_v41  ;;  %v1015_v38 = vpack.c.bf16 %v738_v37, %v737_v36  ;;  %v740_v39 = vld [vmem:[%s1390_s11 + $0x18] sm:$0xff]  ;;  %v741_v41 = vld [vmem:[%s1390_s11 + $0x20] sm:$0xff] }
  0xeb   :  { %998 = vmatpush3.bf16.msra.mxu0 %v997_v42  ;;  %1016 = vmatpush3.bf16.msra.mxu1 %v1015_v38  ;;  %v742_v42 = vld [vmem:[%s1390_s11 + $0x28] sm:$0xff] }
  0xec   :  { %999 = vmatprep.subr.bf16.mxu0 %v1105_v2  ;;  %1017 = vmatprep.subr.bf16.mxu1 %v1105_v2 }
  0xef   :  { %v380_v43 = vld [vmem:[#allocation2 + $0x18] sm:$0xff] }
  0xf0   :  { %v379_v44 = vld [vmem:[#allocation2 + $0x10] sm:$0xff] }
  0xf1   :  { %v1000_v45 = vpack.c.bf16 %v380_v43, %v379_v44  ;;  %v1021_v43 = vpack.c.bf16 %v742_v42, %v741_v41  ;;  %v743_v44 = vld [vmem:[%s1390_s11 + $0x30] sm:$0xff] }
  0xf3   :  { %1001 = vmatpush3.bf16.msra.mxu0 %v1000_v45  ;;  %v744_v45 = vld [vmem:[%s1390_s11 + $0x38] sm:$0xff] }
  0xf4   :  { %1002 = vmatprep.subr.bf16.mxu0 %v1105_v2 }
  0xf6   :  { %937 = vmatmul.mubr.msk.f32.vlgmr.msra.gmra.mrb[0].mxu0 %vm387_vm6, %v376_v46  ;;  %v1024_v46 = vpack.c.bf16 %v744_v45, %v743_v44 }
  0xf7   :  { %949 = vmatprep.mubr.msk.f32.mxu0 %vm1106_vm1, %v1107_v3 }
 0x1c9   :  { %v457_v48 = vpop.f32.mrb[0].mxu0 }
 0x1ca   :  { %v458_v49 = vadd.f32 %v457_v48, %v385_v47  ;;  %v938_v50 = vpop.f32.mrb[1].mxu0  ;;  %v745_v47 = vld [vmem:[%s1390_s11 + $0x40] sm:$0xff]  ;;  %v746_v48 = vld [vmem:[%s1390_s11 + $0x48] sm:$0xff] }
 0x1cb   :  { %v747_v50 = vld [vmem:[%s1390_s11 + $0x50] sm:$0xff] }
 0x1cc   :  { %v462_v51 = vmul.f32 1.442695, %v458_v49  ;;  %vm461_vm8 = vcmp.gt.f32.partialorder %v458_v49, 0.0 }
 0x1ce   :  { %1061 = vpow2.f32 %v462_v51  ;;  %v748_v51 = vld [vmem:[%s1390_s11 + $0x58] sm:$0xff] }
 0x1d8   :  { %v1062_v52 = vpop.eup %1061 }
 0x1d9   :  { %v890_v53 = vadd.f32 -1.0, %v1062_v52  ;;  %v1030_v52 = vpack.c.bf16 %v748_v51, %v747_v50 }
 0x1db   :  { %v465_v54 = vsel %vm461_vm8, %v458_v49, %v890_v53  ;;  %v1027_v49 = vpack.c.bf16 %v746_v48, %v745_v47  ;;  %v749_v53 = vld [vmem:[%s1390_s11 + $0x60] sm:$0xff] }
 0x1dc   :  { %486 = vrot.lane.b32.xlu0 %v465_v54, %s1097_s21  ;;  %472 = vrot.lane.b32.xlu1 %v465_v54, %s1109_s3  ;;  %485 = vst.msk [vmem:[#allocation3 + $0x10] sm:$0xf] %vm477_vm7, %v465_v54 }
 0x1e0   :  { %507 = vperm.xlu0 %1051, %v504_v55   ;;  %479 = vrot.lane.b32.xlu1 %v465_v54, %s1110_s26 }
 0x1e3   :  { %v501_v6 = vld [vmem:[#allocation3 + $0x10] sm:$0xff] }
 0x1e4   :  { %492 = vrot.lane.b32.xlu1 %v465_v54, %s1100_s13  ;;  %v750_v54 = vld [vmem:[%s1390_s11 + $0x68] sm:$0xff] }
 0x1e5   :  { %v1033_v55 = vpack.c.bf16 %v750_v54, %v749_v53 }
 0x24e   :  { %v487_v56 = vpop.permute.xlu0 %486  ;;  %v473_v57 = vpop.permute.xlu1 %472 }
 0x24f   :  { %v490_v0 = vsel %vm489_vm9, %v487_v56, 0.0  ;;  %v476_v58 = vsel %vm475_vm10, 0.0, %v473_v57 }
 0x250   :  { %491 = vst.msk [vmem:[#allocation3 + $0x18] sm:$0xf] %vm477_vm7, %v490_v0  ;;  %478 = vst.msk [vmem:[#allocation3] sm:$0xf] %vm477_vm7, %v476_v58 }
 0x252   :  { %v480_v59 = vpop.permute.xlu1 %479 }
 0x253   :  { %v483_v60 = vsel %vm482_vm11, 0.0, %v480_v59 }
 0x254   :  { %484 = vst.msk [vmem:[#allocation3 + $0x8] sm:$0xf] %vm477_vm7, %v483_v60 }
 0x256   :  { %v493_v61 = vpop.permute.xlu1 %492 }
 0x257   :  { %v496_v62 = vsel %vm495_vm12, %v493_v61, 0.0  ;;  %v499_v63 = vld [vmem:[#allocation3] sm:$0xff]  ;;  %v502_v5 = vld [vmem:[#allocation3 + $0x18] sm:$0xff] }
 0x258   :  { %497 = vst.msk [vmem:[#allocation3 + $0x20] sm:$0xf] %vm477_vm7, %v496_v62  ;;  %v1006_v7 = vpack.c.bf16 %v502_v5, %v501_v6  ;;  %v701_v61 = vld [vmem:[%s1388_s9] sm:$0xff] }
 0x25b   :  { %v500_v1 = vld [vmem:[#allocation3 + $0x8] sm:$0xff] }
 0x25c   :  { %v1003_v4 = vpack.c.bf16 %v500_v1, %v499_v63  ;;  %v702_v63 = vld [vmem:[%s1388_s9 + $0x8] sm:$0xff]  ;;  %v704_v1 = vld [vmem:[%s1388_s9 + $0x18] sm:$0xff] }
 0x25e   :  { %1004 = vmatpush3.bf16.msra.mxu0 %v1003_v4 }
 0x25f   :  { %1005 = vmatprep.subr.bf16.mxu0 %v1105_v2  ;;  %v503_v9 = vld [vmem:[#allocation3 + $0x20] sm:$0xff]  ;;  %v508_v10 = vpop.permute.xlu0 %507 }
 0x262   :  { %1007 = vmatpush3.bf16.msra.mxu0 %v1006_v7 }
 0x263   :  { %947 = vmatprep.subr.mxu0 %v1107_v3 }
 0x266   :  { %948 = vmatpush3.msra.mxu0 %v503_v9 }
 0x267   :  { %950 = vmatmul.mubr.msk.f32.vlgmr.msra.gmra.mrb[2].mxu0 %vm510_vm13, %v498_v8  ;;  %1008 = vmatprep.subr.bf16.mxu0 %v1105_v2 }
 0x268   :  { %962 = vmatprep.mubr.msk.f32.mxu0 %vm1106_vm1, %v1107_v3  ;;  %vm761_vm1 = vcmask 1041409  }
 0x33a   :  { %v580_v11 = vpop.f32.mrb[2].mxu0 }
 0x33b   :  { %v581_v12 = vadd.f32 %v580_v11, %v508_v10  ;;  %v951_v13 = vpop.f32.mrb[3].mxu0 }
 0x33d   :  { %v585_v14 = vmul.f32 1.442695, %v581_v12  ;;  %vm584_vm14 = vcmp.gt.f32.partialorder %v581_v12, 0.0 }
 0x33f   :  { %1063 = vpow2.f32 %v585_v14 }
 0x349   :  { %v1064_v15 = vpop.eup %1063 }
 0x34a   :  { %v892_v16 = vadd.f32 -1.0, %v1064_v15 }
 0x34c   :  { %v588_v17 = vsel %vm584_vm14, %v581_v12, %v892_v16 }
 0x34d   :  { %600 = vst.msk [vmem:[#allocation4 + $0x10] sm:$0xff] %vm347_vm0, %v588_v17  ;;  %595 = vrot.lane.b32.xlu0 %v588_v17, %s1110_s26  ;;  %590 = vrot.lane.b32.xlu1 %v588_v17, %s1109_s3 }
 0x351   :  { %606 = vrot.lane.b32.xlu0 %v588_v17, %s1100_s13  ;;  %601 = vrot.lane.b32.xlu1 %v588_v17, %s1097_s21 }
 0x354   :  { %v614_v31 = vld [vmem:[#allocation4 + $0x10] sm:$0xff] }
 0x355   :  { %754 = vperm.xlu0 %1051, %v751_v18   ;;  %620 = vperm.xlu1 %1052, %v617_v19  }
 0x3bf   :  { %v596_v20 = vpop.permute.xlu0 %595  ;;  %v591_v21 = vpop.permute.xlu1 %590 }
 0x3c0   :  { %v598_v22 = vsel %vm482_vm11, 0.0, %v596_v20  ;;  %v593_v23 = vsel %vm475_vm10, 0.0, %v591_v21 }
 0x3c1   :  { %599 = vst.msk [vmem:[#allocation4 + $0x8] sm:$0xff] %vm347_vm0, %v598_v22  ;;  %594 = vst.msk [vmem:[#allocation4] sm:$0xff] %vm347_vm0, %v593_v23 }
 0x3c3   :  { %v607_v24 = vpop.permute.xlu0 %606  ;;  %v602_v25 = vpop.permute.xlu1 %601 }
 0x3c4   :  { %v609_v26 = vsel %vm495_vm12, %v607_v24, 0.0  ;;  %v604_v27 = vsel %vm489_vm9, %v602_v25, 0.0 }
 0x3c5   :  { %610 = vst.msk [vmem:[#allocation4 + $0x20] sm:$0xff] %vm347_vm0, %v609_v26  ;;  %605 = vst.msk [vmem:[#allocation4 + $0x18] sm:$0xff] %vm347_vm0, %v604_v27 }
 0x3c8   :  { %v612_v28 = vld [vmem:[#allocation4] sm:$0xff]  ;;  %v613_v29 = vld [vmem:[#allocation4 + $0x8] sm:$0xff] }
 0x3c9   :  { %v1009_v30 = vpack.c.bf16 %v613_v29, %v612_v28 }
 0x3cb   :  { %1010 = vmatpush3.bf16.msra.mxu0 %v1009_v30 }
 0x3cc   :  { %1011 = vmatprep.subr.bf16.mxu0 %v1105_v2  ;;  %v615_v32 = vld [vmem:[#allocation4 + $0x18] sm:$0xff]  ;;  %v616_v35 = vld [vmem:[#allocation4 + $0x20] sm:$0xff] }
 0x3cd   :  { %v1012_v33 = vpack.c.bf16 %v615_v32, %v614_v31 }
 0x3cf   :  { %1013 = vmatpush3.bf16.msra.mxu0 %v1012_v33 }
 0x3d0   :  { %960 = vmatprep.subr.mxu0 %v1107_v3  ;;  %v739_v3 = vld [vmem:[%s1390_s11 + $0x10] sm:$0xff] }
 0x3d1   :  { %v1018_v40 = vpack.c.bf16 %v740_v39, %v739_v3 }
 0x3d3   :  { %961 = vmatpush3.msra.mxu0 %v616_v35  ;;  %1019 = vmatpush3.bf16.msra.mxu1 %v1018_v40 }
 0x3d4   :  { %963 = vmatmul.mubr.msk.f32.vlgmr.msra.gmra.mrb[4].mxu0 %vm510_vm13, %v611_v34  ;;  %1020 = vmatprep.subr.bf16.mxu1 %v1105_v2  ;;  %v621_v56 = vpop.permute.xlu1 %620  ;;  %v755_v39 = vpop.permute.xlu0 %754 }
 0x3d7   :  { %1022 = vmatpush3.bf16.msra.mxu1 %v1021_v43 }
 0x3d8   :  { %1023 = vmatprep.subr.bf16.mxu1 %v1105_v2 }
 0x3db   :  { %1025 = vmatpush3.bf16.msra.mxu1 %v1024_v46 }
 0x3dc   :  { %1026 = vmatprep.subr.bf16.mxu1 %v1105_v2 }
 0x3df   :  { %1028 = vmatpush3.bf16.msra.mxu1 %v1027_v49 }
 0x3e0   :  { %1029 = vmatprep.subr.bf16.mxu1 %v1105_v2 }
 0x3e3   :  { %1031 = vmatpush3.bf16.msra.mxu1 %v1030_v52 }
 0x3e4   :  { %1032 = vmatprep.subr.bf16.mxu1 %v1105_v2  ;;  %v703_v2 = vld [vmem:[%s1388_s9 + $0x10] sm:$0xff] }
 0x3e7   :  { %1034 = vmatpush3.bf16.msra.mxu1 %v1033_v55 }
 0x4a7   :  { %v692_v57 = vpop.f32.mrb[4].mxu0 }
 0x4a8   :  { %v693_v0 = vadd.f32 %v692_v57, %v621_v56  ;;  %v964_v58 = vpop.f32.mrb[5].mxu0 }
 0x4aa   :  { %v697_v59 = vmul.f32 1.442695, %v693_v0  ;;  %vm696_vm15 = vcmp.gt.f32.partialorder %v693_v0, 0.0 }
 0x4ac   :  { %1065 = vpow2.f32 %v697_v59 }
 0x4b6   :  { %v1066_v60 = vpop.eup %1065 }
 0x4b7   :  { %v894_v62 = vadd.f32 -1.0, %v1066_v60 }
 0x4b9   :  { %v700_v4 = vsel %vm696_vm15, %v693_v0, %v894_v62 }
 0x4ba   :  { %v705_v5 = vmul.f32 %v701_v61, %v700_v4  ;;  %v706_v6 = vmul.f32 %v702_v63, %v700_v4  ;;  %v707_v7 = vmul.f32 %v703_v2, %v700_v4  ;;  %v708_v8 = vmul.f32 %v704_v1, %v700_v4 }
 0x4bc   :  { %v709_v9 = vsel %vm347_vm0, %v705_v5, 0.0  ;;  %v716_v10 = vsel %vm347_vm0, %v706_v6, 0.0  ;;  %v723_v11 = vsel %vm347_vm0, %v707_v7, 0.0  ;;  %v730_v12 = vsel %vm347_vm0, %v708_v8, 0.0 }
 0x4bd   :  { %v710_v13 = vrot.slane %v709_v9, 4  ;;  %v717_v14 = vrot.slane %v716_v10, 4  ;;  %v724_v15 = vrot.slane %v723_v11, 4  ;;  %v731_v16 = vrot.slane %v730_v12, 4 }
 0x4bf   :  { %v711_v17 = vadd.f32 %v710_v13, %v709_v9  ;;  %v718_v18 = vadd.f32 %v717_v14, %v716_v10  ;;  %v725_v19 = vadd.f32 %v724_v15, %v723_v11  ;;  %v732_v20 = vadd.f32 %v731_v16, %v730_v12 }
 0x4c1   :  { %v712_v21 = vrot.slane %v711_v17, 2  ;;  %v719_v22 = vrot.slane %v718_v18, 2  ;;  %v726_v23 = vrot.slane %v725_v19, 2  ;;  %v733_v24 = vrot.slane %v732_v20, 2 }
 0x4c3   :  { %v713_v25 = vadd.f32 %v712_v21, %v711_v17  ;;  %v720_v26 = vadd.f32 %v719_v22, %v718_v18  ;;  %v727_v27 = vadd.f32 %v726_v23, %v725_v19  ;;  %v734_v28 = vadd.f32 %v733_v24, %v732_v20 }
 0x4c5   :  { %v714_v29 = vrot.slane %v713_v25, 1  ;;  %v721_v30 = vrot.slane %v720_v26, 1  ;;  %v728_v31 = vrot.slane %v727_v27, 1  ;;  %v735_v32 = vrot.slane %v734_v28, 1 }
 0x4c7   :  { %v715_v33 = vadd.f32 %v714_v29, %v713_v25  ;;  %v722_v34 = vadd.f32 %v721_v30, %v720_v26  ;;  %v729_v35 = vadd.f32 %v728_v31, %v727_v27  ;;  %v736_v36 = vadd.f32 %v735_v32, %v734_v28 }
 0x4c9   :  { %v762_v37 = vsel %vm761_vm1, %v722_v34, %v715_v33 }
 0x4ca   :  { %v764_v38 = vsel %vm763_vm2, %v729_v35, %v762_v37 }
 0x4cb   :  { %v766_v3 = vsel %vm765_vm3, %v736_v36, %v764_v38 }
 0x4cc   :  { %994 = vmatmul.mubr.msk.f32.vlgmr.msra.gmra.mrb[0].mxu1 %vm347_vm0, %v766_v3 }
 0x59f   :  { %v835_v40 = vpop.f32.mrb[0].mxu1 }
 0x5a0   :  { %v836_v41 = vadd.f32 %v835_v40, %v755_v39  ;;  %v995_v42 = vpop.f32.mrb[1].mxu1 }
 0x5a2   :  { %840 = vst.msk [vmem:[%s1391_s12] sm:$0xf] %vm839_vm4, %v836_v41 }
 0x5a3   :  { %845 = vsyncpa [#allocation6], 1 }
 0x5a4   :  { %846 = vsyncpa [#allocation8], 1 }

</bundles_post_ra>
